<compile_context>
chip_gen: v6e
topology: v6e:2x2x1
jax: 0.10.0
libtpu: 0.0.40
codegen_flags: <defaults>
</compile_context>

<pallas_src>
import functools

import numpy as np

import jax
import jax.numpy as jnp
from jax.experimental import pallas as pl
from jax.experimental.pallas import tpu as pltpu

_LANE = 128          # lane-dense padded N (raise to 256 on v6e/v7x for big Cout)
_TM = 256            # max rows per grid step (raise with vmem_limit for big M)
_BN_EPS = 1e-5       # PyTorch BatchNorm2d default


def _round_up(x, m):
    return (x + m - 1) // m * m


def _pick_tiling(m, tm_target=_TM):
    """Row tiling.  Whenever M >= 16 we force >= 2 grid steps so both v7x
    TensorCores get work (the grid axis is marked "parallel")."""
    if m >= 16:
        tm = min(tm_target, _round_up((m + 1) // 2, 8))
    else:
        tm = _round_up(max(m, 1), 8)
    mpad = _round_up(m, tm)
    return tm, mpad, mpad // tm


# ---------------------------------------------------------------------------
# Pallas kernels: fused  out = act(X @ W + b)   (+ per-tile BN sums)
# ---------------------------------------------------------------------------
def _apply_activation(acc, activation):
    if activation == "relu":
        return jnp.maximum(acc, 0.0)
    if activation == "sigmoid":
        # Exact sigmoid (exp on the EUP); no approx-reciprocal drift.
        return 1.0 / (1.0 + jnp.exp(-acc))
    return acc


def _mm_kernel(x_ref, w_ref, b_ref, o_ref, *, activation):
    acc = jnp.dot(x_ref[...], w_ref[...], preferred_element_type=jnp.float32)
    acc = _apply_activation(acc + b_ref[...], activation)
    o_ref[...] = acc.astype(o_ref.dtype)


def _tile_stats(acc):
    # Single (1, 2, Npad) store: row 0 = sum, row 1 = sum of squares.
    return jnp.concatenate(
        [jnp.sum(acc, axis=0, keepdims=True),
         jnp.sum(acc * acc, axis=0, keepdims=True)], axis=0)[None]


def _mm_stats_kernel(x_ref, w_ref, b_ref, o_ref, stats_ref, *, activation,
                     m_valid, tm):
    acc = jnp.dot(x_ref[...], w_ref[...], preferred_element_type=jnp.float32)
    acc = _apply_activation(acc + b_ref[...], activation)
    o_ref[...] = acc.astype(o_ref.dtype)

    if m_valid % tm == 0:
        stats_ref[...] = _tile_stats(acc)
    else:
        # Padded rows only exist in the last tile: mask only there (pl.when).
        is_last = pl.program_id(0) == pl.num_programs(0) - 1

        @pl.when(jnp.logical_not(is_last))
        def _():
            stats_ref[...] = _tile_stats(acc)

        @pl.when(is_last)
        def _():
            row = pl.program_id(0) * tm + jax.lax.broadcasted_iota(
                jnp.int32, acc.shape, 0)
            stats_ref[...] = _tile_stats(jnp.where(row < m_valid, acc, 0.0))


_COMPILER_PARAMS = pltpu.CompilerParams(
    dimension_semantics=("parallel",),       # row tiles split across TCs
    vmem_limit_bytes=48 * 1024 * 1024,       # safe on v5e/v6e/v7x at these tiles
)


def fused_matmul(x, w, b, *, activation="none", collect_stats=False,
                 out_dtype=jnp.bfloat16, tm_target=_TM):
    """out[(Mpad, Npad)] = act(x @ w + b); bf16 operands, f32 accumulate.
    Optionally emits per-tile (sum, sumsq) over rows for the BN reduction."""
    M, K = x.shape
    Kw, N = w.shape
    assert K == Kw
    Npad = _round_up(N, _LANE)
    tm, Mpad, grid = _pick_tiling(M, tm_target)

    if Mpad != M:
        x = jnp.pad(x, ((0, Mpad - M), (0, 0)))
    if Npad != N:
        w = jnp.pad(w, ((0, 0), (0, Npad - N)))
        b = jnp.pad(b, (0, Npad - N))

    xb = x.astype(jnp.bfloat16)
    wb = w.astype(jnp.bfloat16)
    b2 = b.astype(jnp.float32).reshape(1, Npad)

    in_specs = [
        pl.BlockSpec((tm, K), lambda i: (i, 0)),      # row tile of im2col
        pl.BlockSpec((K, Npad), lambda i: (0, 0)),    # weights stay resident
        pl.BlockSpec((1, Npad), lambda i: (0, 0)),    # bias resident
    ]
    out_spec = pl.BlockSpec((tm, Npad), lambda i: (i, 0))

    if collect_stats:
        out, stats = pl.pallas_call(
            functools.partial(_mm_stats_kernel, activation=activation,
                              m_valid=M, tm=tm),
            grid=(grid,),
            in_specs=in_specs,
            out_specs=(out_spec,
                       pl.BlockSpec((1, 2, Npad), lambda i: (i, 0, 0))),
            out_shape=(jax.ShapeDtypeStruct((Mpad, Npad), out_dtype),
                       jax.ShapeDtypeStruct((grid, 2, Npad), jnp.float32)),
            compiler_params=_COMPILER_PARAMS,
        )(xb, wb, b2)
        return out, stats, Npad

    out = pl.pallas_call(
        functools.partial(_mm_kernel, activation=activation),
        grid=(grid,),
        in_specs=in_specs,
        out_specs=out_spec,
        out_shape=jax.ShapeDtypeStruct((Mpad, Npad), out_dtype),
        compiler_params=_COMPILER_PARAMS,
    )(xb, wb, b2)
    return out, None, Npad


# ---------------------------------------------------------------------------
# Static geometry (numpy, trace-time constants)
# ---------------------------------------------------------------------------
def _layer_geometry(k, s):
    """Tap offsets / phase ids of the flipped kernel for a ConvTranspose2d with
    padding=(k-1)//2, output_padding=s-k+2p (=> H_out = s*H_in).  Output row
    q*s + r reads input row q + d with flipped-kernel tap j = d*s + lo - r."""
    p = (k - 1) // 2
    lo = k - 1 - p
    r1 = np.array([(lo - j) % s for j in range(k)], np.int64)
    d1 = np.array([(r1[j] + j - lo) // s for j in range(k)], np.int64)
    k2, s2 = k * k, s * s
    dh = np.repeat(d1, k)                       # tap t = jh*k + jw
    dw = np.tile(d1, k)
    ph = np.repeat(r1, k) * s + np.tile(r1, k)  # phase (rh*s + rw) of each tap
    onehot = np.zeros((k2, s2), np.float32)
    onehot[np.arange(k2), ph] = 1.0
    return dict(k=k, s=s, dh=dh, dw=dw, onehot=onehot)


def _validity_mask(H, W, dh, dw):
    """(H*W, k*k) indicator: 1 iff the tap reads an in-range input pixel."""
    ih = np.arange(H)[:, None, None] + dh[None, None, :]
    iw = np.arange(W)[None, :, None] + dw[None, None, :]
    v = ((ih >= 0) & (ih < H) & (iw >= 0) & (iw < W)).astype(np.float32)
    return v.reshape(H * W, dh.shape[0])


# ---------------------------------------------------------------------------
# One ConvTranspose2d layer (+ ReLU [+ BN stats]  or  + Sigmoid)
# ---------------------------------------------------------------------------
def conv_transpose_layer(u, layer_w, layer_b, geom, *, in_scale, in_shift,
                         gamma, beta, activation, collect_stats, out_dtype):
    """u: (B, H, W, Cin) pre-BN activation of the previous layer (or the dense
    output).  The previous layer's BatchNorm affine (in_scale/in_shift) is
    folded into this layer's GEMM exactly (validity columns handle the
    zero-padded borders).  Returns (y_nhwc, scale, shift) where scale/shift is
    this layer's BN affine to fold into the NEXT layer (or None)."""
    B, H, W, Cin = u.shape
    k, s = geom["k"], geom["s"]
    k2, s2 = k * k, s * s
    Cout = layer_w.shape[-1]
    N = s2 * Cout
    dh, dw, onehot = geom["dh"], geom["dw"], geom["onehot"]

    # ---- fold incoming BN affine into the (tiny) packed weight stack (f32).
    if in_scale is None:
        w_scaled = layer_w
        v_rows = jnp.zeros((k2, Cout), jnp.float32)
    else:
        w_scaled = layer_w * in_scale[None, :, None]
        v_rows = jnp.einsum("c,tcn->tn", in_shift, layer_w)
    oh = jnp.asarray(onehot)
    w_main = (w_scaled[:, :, None, :] * oh[:, None, :, None]).reshape(k2 * Cin, N)
    w_valid = (v_rows[:, None, :] * oh[:, :, None]).reshape(k2, N)
    w_all = jnp.concatenate([w_main, w_valid], axis=0)        # (k2*Cin+k2, N)
    b_all = jnp.tile(layer_b, s2)                              # (N,)

    # ---- one shared im2col per layer from a single max-halo pad.
    pt, pb = int(max(0, -dh.min())), int(max(0, dh.max()))
    pleft, pright = int(max(0, -dw.min())), int(max(0, dw.max()))
    xp = jnp.pad(u, ((0, 0), (pt, pb), (pleft, pright), (0, 0)))
    slabs = [xp[:, pt + int(dh[t]):pt + int(dh[t]) + H,
                pleft + int(dw[t]):pleft + int(dw[t]) + W, :]
             for t in range(k2)]
    cols = jnp.stack(slabs, axis=3).reshape(B * H * W, k2 * Cin)
    valid = jnp.broadcast_to(
        jnp.asarray(_validity_mask(H, W, dh, dw), cols.dtype)[None],
        (B, H * W, k2)).reshape(B * H * W, k2)
    cols = jnp.concatenate([cols, valid], axis=1)
    # TODO(synk): form these patches in-kernel from a halo'd VMEM block
    # (manual make_async_copy) to remove this wrapper-side gather pass.

    y_pad, stats, _ = fused_matmul(cols, w_all, b_all, activation=activation,
                                   collect_stats=collect_stats,
                                   out_dtype=out_dtype)

    scale = shift = None
    if collect_stats:
        # BatchNorm2d training-mode stats over (B, H_out, W_out): fold the s^2
        # phase groups packed on the lane axis back onto the channel axis.
        tot = jnp.sum(stats, axis=0)[:, :N].reshape(2, s2, Cout).sum(axis=1)
        count = float(B * H * W * s2)
        mean = tot[0] / count
        var = jnp.maximum(tot[1] / count - mean * mean, 0.0)  # biased, as PyTorch
        # TODO(synk): use a shifted/Welford combine if activations grow large.
        scale = gamma * jax.lax.rsqrt(var + _BN_EPS)
        shift = beta - mean * scale

    # ---- unpack the s*s phases into the interleaved NHWC output (tiny, XLA).
    M = B * H * W
    y = y_pad[:M, :N].reshape(B, H, W, s, s, Cout)
    y = y.transpose(0, 1, 3, 2, 4, 5).reshape(B, H * s, W * s, Cout)
    return y, scale, shift


# ---------------------------------------------------------------------------
# Parameters: synthetic init (PyTorch layout) + one-time packing
# ---------------------------------------------------------------------------
def init_decoder_params(key, latent_dim, shape_before_bottleneck, filters,
                        kernels, out_channels):
    C, H, W = shape_before_bottleneck
    flattened = C * H * W
    params = {}

    key, k1, k2 = jax.random.split(key, 3)
    params["dense_w"] = 0.05 * jax.random.normal(k1, (latent_dim, flattened),
                                                 jnp.float32)
    params["dense_b"] = 0.05 * jax.random.normal(k2, (flattened,), jnp.float32)

    convs = []
    in_ch = C
    for f, kk in zip(filters, kernels):
        key, kw_, kb_ = jax.random.split(key, 3)
        convs.append(dict(
            w=0.05 * jax.random.normal(kw_, (in_ch, f, kk, kk), jnp.float32),
            b=0.05 * jax.random.normal(kb_, (f,), jnp.float32),
            gamma=jnp.ones((f,), jnp.float32),      # BatchNorm2d default init
            beta=jnp.zeros((f,), jnp.float32)))
        in_ch = f
    params["convs"] = convs

    key, kw_, kb_ = jax.random.split(key, 3)
    ko = kernels[-1]
    params["out_w"] = 0.05 * jax.random.normal(
        kw_, (in_ch, out_channels, ko, ko), jnp.float32)
    params["out_b"] = 0.05 * jax.random.normal(kb_, (out_channels,),
                                               jnp.float32)
    return params


def prepare_decoder_params(raw, shape_before_bottleneck, kernels):
    """One-time packing: flip conv kernels to tap-major (k*k, Cin, Cout) stacks,
    permute the dense output columns into (H, W, C) order (so the reshape to
    NHWC is free) and pre-cast the dense weight to bf16.  Runtime BN-dependent
    folds stay in the forward pass (they are data-dependent)."""
    C, H, W = shape_before_bottleneck
    flat = C * H * W
    perm = np.arange(flat).reshape(C, H, W).transpose(1, 2, 0).ravel()

    def _tap_major(w_pt, k):
        w_flip = jnp.transpose(w_pt[:, :, ::-1, ::-1], (2, 3, 0, 1))
        return w_flip.reshape(k * k, w_flip.shape[2], w_flip.shape[3]).astype(
            jnp.float32)

    prep = {
        "dense_w": raw["dense_w"][:, perm].astype(jnp.bfloat16),
        "dense_b": raw["dense_b"][perm].astype(jnp.float32),
        "convs": [dict(w=_tap_major(layer["w"], kk),
                       b=layer["b"].astype(jnp.float32),
                       gamma=layer["gamma"].astype(jnp.float32),
                       beta=layer["beta"].astype(jnp.float32))
                  for layer, kk in zip(raw["convs"], kernels)],
        "out_w": _tap_major(raw["out_w"], kernels[-1]),
        "out_b": raw["out_b"].astype(jnp.float32),
    }
    return prep


def build_decoder_meta(shape_before_bottleneck, kernels, strides):
    """Static (non-jitted) geometry metadata."""
    return {
        "shape": tuple(shape_before_bottleneck),
        "convs": [_layer_geometry(k, s) for k, s in zip(kernels, strides)],
        "out": _layer_geometry(kernels[-1], strides[-1]),
    }


# ---------------------------------------------------------------------------
# Decoder forward
# ---------------------------------------------------------------------------
def convolutional_decoder_forward(params, x, *, meta):
    """x: (B, latent_dim) -> (B, out_channels, H_final, W_final) NCHW."""
    C, H, W = meta["shape"]
    B = x.shape[0]
    flat = C * H * W

    # Dense layer (Linear, no activation).  Columns were pre-permuted to
    # (H, W, C) order, so the reshape below lands directly in NHWC.
    y, _, _ = fused_matmul(x, params["dense_w"], params["dense_b"],
                           activation="none", collect_stats=False,
                           out_dtype=jnp.bfloat16)
    u = y[:B, :flat].reshape(B, H, W, C)

    # ConvTranspose -> ReLU -> BatchNorm blocks.  Each block's BN affine is
    # folded into the NEXT block's GEMM (exact, incl. padded borders).
    scale = shift = None
    for layer, geom in zip(params["convs"], meta["convs"]):
        u, scale, shift = conv_transpose_layer(
            u, layer["w"], layer["b"], geom,
            in_scale=scale, in_shift=shift,
            gamma=layer["gamma"], beta=layer["beta"],
            activation="relu", collect_stats=True, out_dtype=jnp.bfloat16)

    # Output layer: ConvTranspose -> Sigmoid (f32), with the last BN folded in.
    out, _, _ = conv_transpose_layer(
        u, params["out_w"], params["out_b"], meta["out"],
        in_scale=scale, in_shift=shift, gamma=None, beta=None,
        activation="sigmoid", collect_stats=False, out_dtype=jnp.float32)

    return out.transpose(0, 3, 1, 2)   # NHWC -> NCHW (PyTorch convention)


# ---------------------------------------------------------------------------
if __name__ == "__main__":
    latent_space_dimension = 32
    shape_before_bottleneck = (8, 4, 4)          # (C, H, W)
    convolutional_transpose_filters = (8, 4)
    convolutional_transpose_kernels = (3, 3)
    convolutional_transpose_strides = (2, 2)
    out_channels = 3
    batch = 2

    key = jax.random.PRNGKey(0)
    key, pkey, xkey = jax.random.split(key, 3)

    raw_params = init_decoder_params(
        pkey, latent_space_dimension, shape_before_bottleneck,
        convolutional_transpose_filters, convolutional_transpose_kernels,
        out_channels)
    params = prepare_decoder_params(raw_params, shape_before_bottleneck,
                                    convolutional_transpose_kernels)
    meta = build_decoder_meta(shape_before_bottleneck,
                              convolutional_transpose_kernels,
                              convolutional_transpose_strides)

    x = jax.random.normal(xkey, (batch, latent_space_dimension), jnp.float32)

    fwd = jax.jit(functools.partial(convolutional_decoder_forward, meta=meta))
    out = jax.block_until_ready(fwd(params, x))

    # Each transposed conv doubles H and W: 4 -> 8 -> 16 -> 32.
    expected_shape = (batch, out_channels, 32, 32)
    assert out.shape == expected_shape, (out.shape, expected_shape)
    assert bool(jnp.all(jnp.isfinite(out)))
    assert bool(jnp.all((out >= 0.0) & (out <= 1.0)))   # sigmoid output range

    print("KERNEL_OK")
</pallas_src>

<mosaic_0001>
module attributes {stable_mosaic.version = 11 : i64} {
  func.func @_mm_kernel(%arg0: i32, %arg1: memref<8x32xbf16, #tpu.memory_space<vmem>>, %arg2: memref<32x128xbf16, #tpu.memory_space<vmem>>, %arg3: memref<1x128xf32, #tpu.memory_space<vmem>>, %arg4: memref<8x128xbf16, #tpu.memory_space<vmem>>) attributes {dimension_semantics = [#tpu.dimension_semantics<parallel>], iteration_bounds = array<i64: 1>, scalar_prefetch = 0 : i64, scratch_operands = 0 : i64, tpu.core_type = #tpu.core_type<tc>, window_params = [{transform_indices = @transform_0, window_bounds = array<i64: 8, 32>}, {pipeline_mode = #tpu.pipeline_mode<synchronous>, transform_indices = @transform_1, window_bounds = array<i64: 32, 128>}, {pipeline_mode = #tpu.pipeline_mode<synchronous>, transform_indices = @transform_2, window_bounds = array<i64: 1, 128>}, {transform_indices = @transform_3, window_bounds = array<i64: 8, 128>}]} {
    %c0 = arith.constant 0 : index
    %c0_0 = arith.constant 0 : index
    %0 = vector.load %arg1[%c0, %c0_0] : memref<8x32xbf16, #tpu.memory_space<vmem>>, vector<8x32xbf16>
    %c0_1 = arith.constant 0 : index
    %c0_2 = arith.constant 0 : index
    %1 = vector.load %arg2[%c0_1, %c0_2] : memref<32x128xbf16, #tpu.memory_space<vmem>>, vector<32x128xbf16>
    %cst = arith.constant dense<0.000000e+00> : vector<8x128xf32>
    %2 = tpu.matmul %0, %1, %cst {dimension_numbers = #tpu.dot_dimension_numbers<[1], [0], [0], [1], [0, 0, 1, 1], [], []>} : vector<8x32xbf16>, vector<32x128xbf16>, vector<8x128xf32> -> vector<8x128xf32>
    %c0_3 = arith.constant 0 : index
    %c0_4 = arith.constant 0 : index
    %3 = vector.load %arg3[%c0_3, %c0_4] : memref<1x128xf32, #tpu.memory_space<vmem>>, vector<1x128xf32>
    %4 = vector.broadcast %3 : vector<1x128xf32> to vector<8x128xf32>
    %5 = arith.addf %2, %4 : vector<8x128xf32>
    %6 = arith.truncf %5 : vector<8x128xf32> to vector<8x128xbf16>
    %c0_5 = arith.constant 0 : index
    %c0_6 = arith.constant 0 : index
    %7 = vector.load %arg4[%c0_5, %c0_6] : memref<8x128xbf16, #tpu.memory_space<vmem>>, vector<8x128xbf16>
    tpu.vector_store %arg4[%c0_5, %c0_6], %6 {strides = array<i32>} : memref<8x128xbf16, #tpu.memory_space<vmem>>, vector<8x128xbf16>,
    return
  }
  func.func @transform_0(%arg0: i32) -> (i32, i32) {
    %c0_i32 = arith.constant 0 : i32
    %c0_i32_0 = arith.constant 0 : i32
    return %arg0, %c0_i32 : i32, i32
  }
  func.func @transform_1(%arg0: i32) -> (i32, i32) {
    %c0_i32 = arith.constant 0 : i32
    %c0_i32_0 = arith.constant 0 : i32
    %c0_i32_1 = arith.constant 0 : i32
    return %c0_i32, %c0_i32_0 : i32, i32
  }
  func.func @transform_2(%arg0: i32) -> (i32, i32) {
    %c0_i32 = arith.constant 0 : i32
    %c0_i32_0 = arith.constant 0 : i32
    %c0_i32_1 = arith.constant 0 : i32
    return %c0_i32, %c0_i32_0 : i32, i32
  }
  func.func @transform_3(%arg0: i32) -> (i32, i32) {
    %c0_i32 = arith.constant 0 : i32
    %c0_i32_0 = arith.constant 0 : i32
    return %arg0, %c0_i32 : i32, i32
  }
}

module attributes {stable_mosaic.version = 11 : i64} {
  func.func @_mm_stats_kernel(%arg0: i32, %arg1: memref<16x81xbf16, #tpu.memory_space<vmem>>, %arg2: memref<81x128xbf16, #tpu.memory_space<vmem>>, %arg3: memref<1x128xf32, #tpu.memory_space<vmem>>, %arg4: memref<16x128xbf16, #tpu.memory_space<vmem>>, %arg5: memref<1x2x128xf32, #tpu.memory_space<vmem>>) attributes {dimension_semantics = [#tpu.dimension_semantics<parallel>], iteration_bounds = array<i64: 2>, scalar_prefetch = 0 : i64, scratch_operands = 0 : i64, tpu.core_type = #tpu.core_type<tc>, window_params = [{transform_indices = @transform_0, window_bounds = array<i64: 16, 81>}, {pipeline_mode = #tpu.pipeline_mode<synchronous>, transform_indices = @transform_1, window_bounds = array<i64: 81, 128>}, {pipeline_mode = #tpu.pipeline_mode<synchronous>, transform_indices = @transform_2, window_bounds = array<i64: 1, 128>}, {transform_indices = @transform_3, window_bounds = array<i64: 16, 128>}, {transform_indices = @transform_4, window_bounds = array<i64: 1, 2, 128>}]} {
    %c0 = arith.constant 0 : index
    %c0_0 = arith.constant 0 : index
    %0 = vector.load %arg1[%c0, %c0_0] : memref<16x81xbf16, #tpu.memory_space<vmem>>, vector<16x81xbf16>
    %c0_1 = arith.constant 0 : index
    %c0_2 = arith.constant 0 : index
    %1 = vector.load %arg2[%c0_1, %c0_2] : memref<81x128xbf16, #tpu.memory_space<vmem>>, vector<81x128xbf16>
    %cst = arith.constant dense<0.000000e+00> : vector<16x128xf32>
    %2 = tpu.matmul %0, %1, %cst {dimension_numbers = #tpu.dot_dimension_numbers<[1], [0], [0], [1], [0, 0, 1, 1], [], []>} : vector<16x81xbf16>, vector<81x128xbf16>, vector<16x128xf32> -> vector<16x128xf32>
    %c0_3 = arith.constant 0 : index
    %c0_4 = arith.constant 0 : index
    %3 = vector.load %arg3[%c0_3, %c0_4] : memref<1x128xf32, #tpu.memory_space<vmem>>, vector<1x128xf32>
    %4 = vector.broadcast %3 : vector<1x128xf32> to vector<16x128xf32>
    %5 = arith.addf %2, %4 : vector<16x128xf32>
    %cst_5 = arith.constant 0.000000e+00 : f32
    %6 = vector.broadcast %cst_5 : f32 to vector<16x128xf32>
    %7 = arith.maximumf %5, %6 : vector<16x128xf32>
    %8 = arith.truncf %7 : vector<16x128xf32> to vector<16x128xbf16>
    %c0_6 = arith.constant 0 : index
    %c0_7 = arith.constant 0 : index
    %9 = vector.load %arg4[%c0_6, %c0_7] : memref<16x128xbf16, #tpu.memory_space<vmem>>, vector<16x128xbf16>
    tpu.vector_store %arg4[%c0_6, %c0_7], %8 {strides = array<i32>} : memref<16x128xbf16, #tpu.memory_space<vmem>>, vector<16x128xbf16>,
    %cst_8 = arith.constant dense<0.000000e+00> : vector<128xf32>
    %10 = vector.multi_reduction <add>, %7, %cst_8 [0] : vector<16x128xf32> to vector<128xf32>
    %11 = vector.shape_cast %10 : vector<128xf32> to vector<1x128xf32>
    %12 = arith.mulf %7, %7 : vector<16x128xf32>
    %cst_9 = arith.constant dense<0.000000e+00> : vector<128xf32>
    %13 = vector.multi_reduction <add>, %12, %cst_9 [0] : vector<16x128xf32> to vector<128xf32>
    %14 = vector.shape_cast %13 : vector<128xf32> to vector<1x128xf32>
    %15 = tpu.concatenate %11, %14 in 0 : vector<1x128xf32>, vector<1x128xf32> -> vector<2x128xf32>
    %16 = vector.shape_cast %15 : vector<2x128xf32> to vector<1x2x128xf32>
    %c0_10 = arith.constant 0 : index
    %c0_11 = arith.constant 0 : index
    %c0_12 = arith.constant 0 : index
    %17 = vector.load %arg5[%c0_10, %c0_11, %c0_12] : memref<1x2x128xf32, #tpu.memory_space<vmem>>, vector<1x2x128xf32>
    tpu.vector_store %arg5[%c0_10, %c0_11, %c0_12], %16 {strides = array<i32>} : memref<1x2x128xf32, #tpu.memory_space<vmem>>, vector<1x2x128xf32>,
    return
  }
  func.func @transform_0(%arg0: i32) -> (i32, i32) {
    %c0_i32 = arith.constant 0 : i32
    %c0_i32_0 = arith.constant 0 : i32
    return %arg0, %c0_i32 : i32, i32
  }
  func.func @transform_1(%arg0: i32) -> (i32, i32) {
    %c0_i32 = arith.constant 0 : i32
    %c0_i32_0 = arith.constant 0 : i32
    %c0_i32_1 = arith.constant 0 : i32
    return %c0_i32, %c0_i32_0 : i32, i32
  }
  func.func @transform_2(%arg0: i32) -> (i32, i32) {
    %c0_i32 = arith.constant 0 : i32
    %c0_i32_0 = arith.constant 0 : i32
    %c0_i32_1 = arith.constant 0 : i32
    return %c0_i32, %c0_i32_0 : i32, i32
  }
  func.func @transform_3(%arg0: i32) -> (i32, i32) {
    %c0_i32 = arith.constant 0 : i32
    %c0_i32_0 = arith.constant 0 : i32
    return %arg0, %c0_i32 : i32, i32
  }
  func.func @transform_4(%arg0: i32) -> (i32, i32, i32) {
    %c0_i32 = arith.constant 0 : i32
    %c0_i32_0 = arith.constant 0 : i32
    %c0_i32_1 = arith.constant 0 : i32
    return %arg0, %c0_i32, %c0_i32_0 : i32, i32, i32
  }
}

module attributes {stable_mosaic.version = 11 : i64} {
  func.func @_mm_stats_kernel(%arg0: i32, %arg1: memref<64x81xbf16, #tpu.memory_space<vmem>>, %arg2: memref<81x128xbf16, #tpu.memory_space<vmem>>, %arg3: memref<1x128xf32, #tpu.memory_space<vmem>>, %arg4: memref<64x128xbf16, #tpu.memory_space<vmem>>, %arg5: memref<1x2x128xf32, #tpu.memory_space<vmem>>) attributes {dimension_semantics = [#tpu.dimension_semantics<parallel>], iteration_bounds = array<i64: 2>, scalar_prefetch = 0 : i64, scratch_operands = 0 : i64, tpu.core_type = #tpu.core_type<tc>, window_params = [{transform_indices = @transform_0, window_bounds = array<i64: 64, 81>}, {pipeline_mode = #tpu.pipeline_mode<synchronous>, transform_indices = @transform_1, window_bounds = array<i64: 81, 128>}, {pipeline_mode = #tpu.pipeline_mode<synchronous>, transform_indices = @transform_2, window_bounds = array<i64: 1, 128>}, {transform_indices = @transform_3, window_bounds = array<i64: 64, 128>}, {transform_indices = @transform_4, window_bounds = array<i64: 1, 2, 128>}]} {
    %c0 = arith.constant 0 : index
    %c0_0 = arith.constant 0 : index
    %0 = vector.load %arg1[%c0, %c0_0] : memref<64x81xbf16, #tpu.memory_space<vmem>>, vector<64x81xbf16>
    %c0_1 = arith.constant 0 : index
    %c0_2 = arith.constant 0 : index
    %1 = vector.load %arg2[%c0_1, %c0_2] : memref<81x128xbf16, #tpu.memory_space<vmem>>, vector<81x128xbf16>
    %cst = arith.constant dense<0.000000e+00> : vector<64x128xf32>
    %2 = tpu.matmul %0, %1, %cst {dimension_numbers = #tpu.dot_dimension_numbers<[1], [0], [0], [1], [0, 0, 1, 1], [], []>} : vector<64x81xbf16>, vector<81x128xbf16>, vector<64x128xf32> -> vector<64x128xf32>
    %c0_3 = arith.constant 0 : index
    %c0_4 = arith.constant 0 : index
    %3 = vector.load %arg3[%c0_3, %c0_4] : memref<1x128xf32, #tpu.memory_space<vmem>>, vector<1x128xf32>
    %4 = vector.broadcast %3 : vector<1x128xf32> to vector<64x128xf32>
    %5 = arith.addf %2, %4 : vector<64x128xf32>
    %cst_5 = arith.constant 0.000000e+00 : f32
    %6 = vector.broadcast %cst_5 : f32 to vector<64x128xf32>
    %7 = arith.maximumf %5, %6 : vector<64x128xf32>
    %8 = arith.truncf %7 : vector<64x128xf32> to vector<64x128xbf16>
    %c0_6 = arith.constant 0 : index
    %c0_7 = arith.constant 0 : index
    %9 = vector.load %arg4[%c0_6, %c0_7] : memref<64x128xbf16, #tpu.memory_space<vmem>>, vector<64x128xbf16>
    tpu.vector_store %arg4[%c0_6, %c0_7], %8 {strides = array<i32>} : memref<64x128xbf16, #tpu.memory_space<vmem>>, vector<64x128xbf16>,
    %cst_8 = arith.constant dense<0.000000e+00> : vector<128xf32>
    %10 = vector.multi_reduction <add>, %7, %cst_8 [0] : vector<64x128xf32> to vector<128xf32>
    %11 = vector.shape_cast %10 : vector<128xf32> to vector<1x128xf32>
    %12 = arith.mulf %7, %7 : vector<64x128xf32>
    %cst_9 = arith.constant dense<0.000000e+00> : vector<128xf32>
    %13 = vector.multi_reduction <add>, %12, %cst_9 [0] : vector<64x128xf32> to vector<128xf32>
    %14 = vector.shape_cast %13 : vector<128xf32> to vector<1x128xf32>
    %15 = tpu.concatenate %11, %14 in 0 : vector<1x128xf32>, vector<1x128xf32> -> vector<2x128xf32>
    %16 = vector.shape_cast %15 : vector<2x128xf32> to vector<1x2x128xf32>
    %c0_10 = arith.constant 0 : index
    %c0_11 = arith.constant 0 : index
    %c0_12 = arith.constant 0 : index
    %17 = vector.load %arg5[%c0_10, %c0_11, %c0_12] : memref<1x2x128xf32, #tpu.memory_space<vmem>>, vector<1x2x128xf32>
    tpu.vector_store %arg5[%c0_10, %c0_11, %c0_12], %16 {strides = array<i32>} : memref<1x2x128xf32, #tpu.memory_space<vmem>>, vector<1x2x128xf32>,
    return
  }
  func.func @transform_0(%arg0: i32) -> (i32, i32) {
    %c0_i32 = arith.constant 0 : i32
    %c0_i32_0 = arith.constant 0 : i32
    return %arg0, %c0_i32 : i32, i32
  }
  func.func @transform_1(%arg0: i32) -> (i32, i32) {
    %c0_i32 = arith.constant 0 : i32
    %c0_i32_0 = arith.constant 0 : i32
    %c0_i32_1 = arith.constant 0 : i32
    return %c0_i32, %c0_i32_0 : i32, i32
  }
  func.func @transform_2(%arg0: i32) -> (i32, i32) {
    %c0_i32 = arith.constant 0 : i32
    %c0_i32_0 = arith.constant 0 : i32
    %c0_i32_1 = arith.constant 0 : i32
    return %c0_i32, %c0_i32_0 : i32, i32
  }
  func.func @transform_3(%arg0: i32) -> (i32, i32) {
    %c0_i32 = arith.constant 0 : i32
    %c0_i32_0 = arith.constant 0 : i32
    return %arg0, %c0_i32 : i32, i32
  }
  func.func @transform_4(%arg0: i32) -> (i32, i32, i32) {
    %c0_i32 = arith.constant 0 : i32
    %c0_i32_0 = arith.constant 0 : i32
    %c0_i32_1 = arith.constant 0 : i32
    return %arg0, %c0_i32, %c0_i32_0 : i32, i32, i32
  }
}

module attributes {stable_mosaic.version = 11 : i64} {
  func.func @_mm_kernel(%arg0: i32, %arg1: memref<256x45xbf16, #tpu.memory_space<vmem>>, %arg2: memref<45x128xbf16, #tpu.memory_space<vmem>>, %arg3: memref<1x128xf32, #tpu.memory_space<vmem>>, %arg4: memref<256x128xf32, #tpu.memory_space<vmem>>) attributes {dimension_semantics = [#tpu.dimension_semantics<parallel>], iteration_bounds = array<i64: 2>, scalar_prefetch = 0 : i64, scratch_operands = 0 : i64, tpu.core_type = #tpu.core_type<tc>, window_params = [{transform_indices = @transform_0, window_bounds = array<i64: 256, 45>}, {pipeline_mode = #tpu.pipeline_mode<synchronous>, transform_indices = @transform_1, window_bounds = array<i64: 45, 128>}, {pipeline_mode = #tpu.pipeline_mode<synchronous>, transform_indices = @transform_2, window_bounds = array<i64: 1, 128>}, {transform_indices = @transform_3, window_bounds = array<i64: 256, 128>}]} {
    %c0 = arith.constant 0 : index
    %c0_0 = arith.constant 0 : index
    %0 = vector.load %arg1[%c0, %c0_0] : memref<256x45xbf16, #tpu.memory_space<vmem>>, vector<256x45xbf16>
    %c0_1 = arith.constant 0 : index
    %c0_2 = arith.constant 0 : index
    %1 = vector.load %arg2[%c0_1, %c0_2] : memref<45x128xbf16, #tpu.memory_space<vmem>>, vector<45x128xbf16>
    %cst = arith.constant dense<0.000000e+00> : vector<256x128xf32>
    %2 = tpu.matmul %0, %1, %cst {dimension_numbers = #tpu.dot_dimension_numbers<[1], [0], [0], [1], [0, 0, 1, 1], [], []>} : vector<256x45xbf16>, vector<45x128xbf16>, vector<256x128xf32> -> vector<256x128xf32>
    %c0_3 = arith.constant 0 : index
    %c0_4 = arith.constant 0 : index
    %3 = vector.load %arg3[%c0_3, %c0_4] : memref<1x128xf32, #tpu.memory_space<vmem>>, vector<1x128xf32>
    %4 = vector.broadcast %3 : vector<1x128xf32> to vector<256x128xf32>
    %5 = arith.addf %2, %4 : vector<256x128xf32>
    %cst_5 = arith.constant 0.000000e+00 : f32
    %6 = vector.broadcast %cst_5 : f32 to vector<256x128xf32>
    %7 = arith.subf %6, %5 : vector<256x128xf32>
    %8 = math.exp %7 : vector<256x128xf32>
    %cst_6 = arith.constant 1.000000e+00 : f32
    %9 = vector.broadcast %cst_6 : f32 to vector<256x128xf32>
    %10 = arith.addf %9, %8 : vector<256x128xf32>
    %cst_7 = arith.constant 1.000000e+00 : f32
    %11 = vector.broadcast %cst_7 : f32 to vector<256x128xf32>
    %12 = arith.divf %11, %10 : vector<256x128xf32>
    %c0_8 = arith.constant 0 : index
    %c0_9 = arith.constant 0 : index
    %13 = vector.load %arg4[%c0_8, %c0_9] : memref<256x128xf32, #tpu.memory_space<vmem>>, vector<256x128xf32>
    tpu.vector_store %arg4[%c0_8, %c0_9], %12 {strides = array<i32>} : memref<256x128xf32, #tpu.memory_space<vmem>>, vector<256x128xf32>,
    return
  }
  func.func @transform_0(%arg0: i32) -> (i32, i32) {
    %c0_i32 = arith.constant 0 : i32
    %c0_i32_0 = arith.constant 0 : i32
    return %arg0, %c0_i32 : i32, i32
  }
  func.func @transform_1(%arg0: i32) -> (i32, i32) {
    %c0_i32 = arith.constant 0 : i32
    %c0_i32_0 = arith.constant 0 : i32
    %c0_i32_1 = arith.constant 0 : i32
    return %c0_i32, %c0_i32_0 : i32, i32
  }
  func.func @transform_2(%arg0: i32) -> (i32, i32) {
    %c0_i32 = arith.constant 0 : i32
    %c0_i32_0 = arith.constant 0 : i32
    %c0_i32_1 = arith.constant 0 : i32
    return %c0_i32, %c0_i32_0 : i32, i32
  }
  func.func @transform_3(%arg0: i32) -> (i32, i32) {
    %c0_i32 = arith.constant 0 : i32
    %c0_i32_0 = arith.constant 0 : i32
    return %arg0, %c0_i32 : i32, i32
  }
}

</mosaic_0001>

<bundles_post_ra>
// kernel: convolutional_decoder_forward.4
= control target key start
LH: loop header
LB: loop body
LE: loop exit
PB: predicated region body
PF: predicated region fallthrough
CT: control target
= control target key end

     0   :  { %8 = vsyncpa [#allocation3], 0  ;;  %s222_s0 = inlined_call_operand.vmem [shape: bf16[8,32], index: 0, kind: input, shape index: {}]   ;;  %s223_s1 = inlined_call_operand.hbm [shape: bf16[32,128], index: 1, kind: input, shape index: {}]   ;;  %s224_s2 = inlined_call_operand.hbm [shape: f32[1,128], index: 2, kind: input, shape index: {}]   ;;  %s225_s3 = inlined_call_operand.vmem [shape: bf16[8,128], index: 3, kind: output, shape index: {}]  }
   0x1   :  { %9 = vsyncpa [#allocation5], 0  ;;  %s184_s12 = smov [#allocation2]  }
   0x2   :  { %s17_s13 = sshll.u32 %s184_s12, 4  ;;  %s18_s13 = int_to_ptr.vmem [resolvable:$true] %s17_s13 }
   0x3   :  { %s148_s14 = scalar_lea.vmem %s18_s13, 256  ;;  %p153_p1 = scmp.lt.s32.totalorder %s18_s13, %s18_s13 }
   0x4   :  { %p149_p0 = scmp.ne.s32.totalorder %s18_s13, %s148_s14  ;;  %p154_p2 = scmp.lt.s32.totalorder %s148_s14, %s148_s14 }
   0x6   :  { %p155_p3 = por %p154_p2, %p153_p1 }
   0x8   :  { %p156_p4 = pnand %p155_p3, %p149_p0 }
   0xa   :  { %159 = shalt.err (!%p156_p4)
}
   0xb   :  { %s185_s15 = smov 64   ;;  %s186_s16 = smov 4  }
   0xc   :  { %23 = dma.hbm_to_vmem [thread:$0]  %s223_s1, 256, %s18_s13, [#allocation3], %s185_s15, %s185_s15, %s186_s16  }
   0xd   :  { %s187_s19 = smov [#allocation4]  }
   0xe   :  { %s30_s20 = sshll.u32 %s187_s19, 4  ;;  %s31_s20 = int_to_ptr.vmem [resolvable:$true] %s30_s20 }
   0xf   :  { %s168_s21 = scalar_lea.vmem %s31_s20, 16  ;;  %s172_s22 = scalar_lea.vmem %s31_s20, 32 }
  0x10   :  { %p169_p5 = scmp.ne.s32.totalorder %s31_s20, %s168_s21  ;;  %p173_p6 = scmp.lt.s32.totalorder %s31_s20, %s31_s20 }
  0x11   :  { %p174_p7 = scmp.lt.s32.totalorder %s172_s22, %s168_s21 }
  0x13   :  { %p175_p8 = por %p174_p7, %p173_p6 }
  0x15   :  { %p176_p9 = pnand %p175_p8, %p169_p5 }
  0x17   :  { %179 = shalt.err (!%p176_p9)
}
  0x18   :  { %33 = dma.hbm_to_vmem [thread:$0]  %s224_s2, 16, %s31_s20, [#allocation5]  }
  0x19   :  { %180 = dma.done.wait [#allocation3], 256  }
  0x1a   :  { %181 = vsyncadd [#allocation3], 4294967040 }
  0x1b   :  { %182 = dma.done.wait [#allocation5], 16  }
  0x1c   :  { %183 = vsyncadd [#allocation5], 4294967280  ;;  %v188_v0 = vmov 0.0   ;;  %vm189_vm0 = vmmov 0   ;;  %v138_v1 = vld [vmem:[#allocation2 + $0x8] sm:$0xff]   ;;  %v139_v2 = vld [vmem:[#allocation2] sm:$0xff]  }
  0x1d   :  { %124 = vmatprep.subr.bf16.mxu0 %v188_v0  ;;  %128 = vmatprep.mubr.msk.bf16.mxu0 %vm189_vm0, %v188_v0  ;;  %v41_v3 = vld [vmem:[%s222_s0] sm:$0xf]  ;;  %vm65_vm1 = vcmask 261120   ;;  %v117_v4 = vld [vmem:[#allocation4] ss:$0 sm:$0xff] }
  0x1e   :  { %125 = vmatpush3.bf16.msra.mxu0 %v138_v1 }
  0x1f   :  { %126 = vmatprep.subr.bf16.mxu0 %v188_v0 }
  0x22   :  { %127 = vmatpush3.bf16.msra.mxu0 %v139_v2 }
  0x25   :  { %129 = vmatmul.mubr.msk.bf16.vlgmr.msra.gmra.mxu0 %vm65_vm1, %v41_v3 }
  0xe5   :  { %v103_v5 = vpop.f32.mrf.mxu0 }
  0xe6   :  { %v104_v6 = vadd.f32 %v117_v4, %v103_v5 }
  0xe7   :  { %v130_v7 = vpop.f32.mrf.mxu0 }
  0xe8   :  { %v109_v8 = vpack.c.bf16 %v104_v6, %v104_v6 }
  0xe9   :  { %v106_v9 = vpop.f32.mrf.mxu0 }
  0xea   :  { %110 = vst [vmem:[%s225_s3] sm:$0xf] %v109_v8 }
  0xeb   :  { %v131_v10 = vpop.f32.mrf.mxu0 }
  0xec   :  { %115 = vsyncpa [#allocation3], 1 }
  0xed   :  { %116 = vsyncpa [#allocation5], 1 }

// kernel: tile.18
= control target key start
LH: loop header
LB: loop body
LE: loop exit
PB: predicated region body
PF: predicated region fallthrough
CT: control target
= control target key end

     0   :  { %2 = vsyncpa [#allocation1], 0  ;;  %s42_s6 = smov [#allocation0]   ;;  %s59_s0 = inlined_call_operand.hbm [shape: f32[8], index: 0, kind: input, shape index: {}]   ;;  %s60_s1 = inlined_call_operand.vmem [shape: f32[4,8], index: 1, kind: output, shape index: {}]  }
   0x1   :  { %s9_s7 = sshll.u32 %s42_s6, 4  ;;  %s10_s7 = int_to_ptr.vmem [resolvable:$true] %s9_s7 }
   0x2   :  { %s28_s8 = scalar_lea.vmem %s10_s7, 16  ;;  %s32_s9 = scalar_lea.vmem %s10_s7, 32 }
   0x3   :  { %p29_p0 = scmp.ne.s32.totalorder %s10_s7, %s28_s8  ;;  %p33_p1 = scmp.lt.s32.totalorder %s10_s7, %s10_s7 }
   0x4   :  { %p34_p2 = scmp.lt.s32.totalorder %s32_s9, %s28_s8 }
   0x6   :  { %p35_p3 = por %p34_p2, %p33_p1 }
   0x8   :  { %p36_p4 = pnand %p35_p3, %p29_p0 }
   0xa   :  { %39 = shalt.err (!%p36_p4)
}
   0xb   :  { %12 = dma.hbm_to_vmem [thread:$0]  %s59_s0, 16, %s10_s7, [#allocation1]  }
   0xc   :  { %40 = dma.done.wait [#allocation1], 16  }
   0xd   :  { %41 = vsyncadd [#allocation1], 4294967280  ;;  %v16_v0 = vld [vmem:[#allocation0] ss:$0 sm:$0xff] }
   0xe   :  { %17 = vst [vmem:[%s60_s1] sm:$0xf] %v16_v0 }
   0xf   :  { %18 = vsyncpa [#allocation1], 1 }

// kernel: tile.19
= control target key start
LH: loop header
LB: loop body
LE: loop exit
PB: predicated region body
PF: predicated region fallthrough
CT: control target
= control target key end

     0   :  { %vm8_vm0 = vcmask 64512   ;;  %s40_s8 = smov 8   ;;  %s41_s9 = smov 16   ;;  %vm14_vm1 = vcmask 261312   ;;  %vm20_vm2 = vcmask 195712   ;;  %vm26_vm3 = vcmask 130112   ;;  %s58_s0 = inlined_call_operand.vmem [shape: f32[4,8], index: 0, kind: input, shape index: {}]   ;;  %s59_s1 = inlined_call_operand.vmem [shape: f32[32], index: 1, kind: output, shape index: {}]  }
   0x1   :  { %v5_v0 = vld [vmem:[%s58_s0] sm:$0xf]  ;;  %s39_s0 = smov 24  }
   0x2   :  { %6 = vst [vmem:[#allocation1] sm:$0xf] %v5_v0 }
   0x9   :  { %v11_v1 = vld [vmem:[#allocation1 + $0x3] sm:$0x1]   ;;  %v23_v2 = vld [vmem:[#allocation1 + $0x1] sm:$0x1]   ;;  %v7_v3 = vld [vmem:[#allocation1] sm:$0x1]  }
   0xa   :  { %12 = vrot.lane.b32.xlu0 %v11_v1, %s39_s0  ;;  %24 = vrot.lane.b32.xlu1 %v23_v2, %s40_s8  ;;  %v17_v4 = vld [vmem:[#allocation1 + $0x2] sm:$0x1]   ;;  %9 = vst.msk [vmem:[#allocation0] sm:$0x1] %vm8_vm0, %v7_v3  }
   0xe   :  { %18 = vrot.lane.b32.xlu0 %v17_v4, %s41_s9 }
  0x7c   :  { %v13_v5 = vpop.permute.xlu0 %12   ;;  %v25_v6 = vpop.permute.xlu1 %24  }
  0x7d   :  { %15 = vst.msk [vmem:[#allocation0] sm:$0x1] %vm14_vm1, %v13_v5  }
  0x80   :  { %v19_v7 = vpop.permute.xlu0 %18  }
  0x81   :  { %21 = vst.msk [vmem:[#allocation0] sm:$0x1] %vm20_vm2, %v19_v7  }
  0x82   :  { %27 = vst.msk [vmem:[#allocation0] sm:$0x1] %vm26_vm3, %v25_v6  }
  0x89   :  { %v32_v8 = vld [vmem:[#allocation0] sm:$0x1] }
  0x8a   :  { %35 = vst [vmem:[%s59_s1] sm:$0x1] %v32_v8 }

// kernel: convolutional_decoder_forward.5
= control target key start
LH: loop header
LB: loop body
LE: loop exit
PB: predicated region body
PF: predicated region fallthrough
CT: control target
= control target key end

     0   :  { %s546_s15 = smov 0   ;;  %s597_s0 = inlined_call_operand.vmem [shape: bf16[32,81], index: 0, kind: input, shape index: {}]   ;;  %s598_s1 = inlined_call_operand.vmem [shape: bf16[81,128], index: 1, kind: input, shape index: {}]   ;;  %s599_s2 = inlined_call_operand.vmem [shape: f32[1,128], index: 2, kind: input, shape index: {}]   ;;  %s600_s3 = inlined_call_operand.vmem [shape: bf16[32,128], index: 3, kind: output, shape index: {0}]   ;;  %s601_s4 = inlined_call_operand.vmem [shape: f32[2,2,128], index: 4, kind: output, shape index: {1}]  }
   0x1 LB: > { %s552_s16 = sadd.s32 4294967295, %s516_s15   ;;  %p443_p0 = scmp.ge.s32.totalorder %s516_s15, 1  ;;  %s516_s15 = sphi %s546_s15, %s15_s15  }
   0x2   : > { %p166_p1 = scmp.lt.s32.totalorder %s516_s15, 3 }
   0x4   : > { %p167_p2 = pnand %p443_p0, %p166_p1 }
   0x5   : > { %s444_s19 = sshll.u32 (!%p167_p2), %s552_s16, 1  ;;  %p208_p4 = scmp.lt.s32.totalorder (!%p167_p2), %s552_s16, 1 }
   0x6   : > { %170 = sbr.rel (%p167_p2) target bundleno = 257 (0x101), region = 32  ;;  %p197_p3 = scmp.lt.s32.totalorder (!%p167_p2), %s444_s19, 3 }
   0xb   : > { %v503_v0 = vld [vmem:[%s598_s1 + $0x28] ss:$0 sps:$4 sm:$0x11]   ;;  %v518_v1 = vmov 0.0   ;;  %vm275_vm0 = vcmask 1040384   ;;  %v519_v2 = vmov 0  }
   0xc   : > { %476 = vmatprep.subr.bf16.mxu0 %v518_v1  ;;  %v277_v3 = vsel %vm275_vm0, 65535, %v519_v2  ;;  %vm520_vm1 = vmmov 0   ;;  %v504_v5 = vld [vmem:[%s598_s1 + $0x20] sm:$0xff]   ;;  %s603_s19 = smov (!%p197_p3, %s444_s19), 3  ;;  %v505_v6 = vld [vmem:[%s598_s1 + $0x18] sm:$0xff]   ;;  %v506_v7 = vld [vmem:[%s598_s1 + $0x10] sm:$0xff]  }
   0xd   : > { %v279_v4 = vand.u32 %v503_v0, %v277_v3  ;;  %488 = vmatprep.mubr.msk.bf16.mxu0 %vm520_vm1, %v518_v1  ;;  %s445_s24 = sshll.u32 %s603_s19, 2  ;;  %v507_v8 = vld [vmem:[%s598_s1 + $0x8] sm:$0xff]   ;;  %v508_v9 = vld [vmem:[%s598_s1] sm:$0xff]   ;;  %vm271_vm2 = vcmask 662528   ;;  %s605_s16 = smov (!%p208_p4, %s552_s16), 1 }
   0xe   : > { %s200_s27 = scalar_lea.vmem %s597_s0, %s445_s24  ;;  %v449_v11 = vld [vmem:[%s599_s2] ss:$0 sm:$0xff]  ;;  %s206_s12 = scalar_lea.vmem %s600_s3, %s445_s24 }
   0xf   : > { %477 = vmatpush3.bf16.msra.mxu0 %v279_v4  ;;  %v509_v10 = vld [vmem:[%s200_s27] sm:$0xff]   ;;  %s448_s13 = sshll.u32 %s605_s16, 1 }
  0x10   : > { %478 = vmatprep.subr.bf16.mxu0 %v518_v1  ;;  %s211_s18 = scalar_lea.vmem %s601_s4, %s448_s13 }
  0x13   : > { %479 = vmatpush3.bf16.msra.mxu0 %v504_v5 }
  0x14   : > { %480 = vmatprep.subr.bf16.mxu0 %v518_v1 }
  0x17   : > { %481 = vmatpush3.bf16.msra.mxu0 %v505_v6 }
  0x18   : > { %482 = vmatprep.subr.bf16.mxu0 %v518_v1 }
  0x1b   : > { %483 = vmatpush3.bf16.msra.mxu0 %v506_v7 }
  0x1c   : > { %484 = vmatprep.subr.bf16.mxu0 %v518_v1 }
  0x1f   : > { %485 = vmatpush3.bf16.msra.mxu0 %v507_v8 }
  0x20   : > { %486 = vmatprep.subr.bf16.mxu0 %v518_v1 }
  0x23   : > { %487 = vmatpush3.bf16.msra.mxu0 %v508_v9 }
  0x26   : > { %489 = vmatmul.mubr.msk.bf16.vlgmr.msra.gmra.mxu0 %vm271_vm2, %v509_v10 }
  0xe6   : > { %v315_v12 = vpop.f32.mrf.mxu0 }
  0xe7   : > { %v316_v13 = vadd.f32 %v449_v11, %v315_v12 }
  0xe8   : > { %v490_v14 = vpop.f32.mrf.mxu0 }
  0xe9   : > { %v322_v16 = vmax.f32 %v316_v13, 0.0 }
  0xea   : > { %v318_v15 = vpop.f32.mrf.mxu0 }
  0xeb   : > { %v319_v17 = vadd.f32 %v449_v11, %v318_v15  ;;  %v341_v20 = vmul.f32 %v322_v16, %v322_v16 }
  0xec   : > { %v491_v18 = vpop.f32.mrf.mxu0 }
  0xed   : > { %v323_v19 = vmax.f32 %v319_v17, 0.0 }
  0xef   : > { %v467_v21 = vpack.c.bf16 %v323_v19, %v322_v16  ;;  %v334_v22 = vadd.f32 %v323_v19, %v322_v16  ;;  %v342_v23 = vmul.f32 %v323_v19, %v323_v19 }
  0xf1   : > { %468 = vst [vmem:[%s206_s12] sm:$0xff] %v467_v21   ;;  %v335_v24 = vrot.slane %v334_v22, 4  ;;  %v343_v25 = vadd.f32 %v342_v23, %v341_v20 }
  0xf3   : > { %v336_v26 = vadd.f32 %v335_v24, %v334_v22  ;;  %v344_v27 = vrot.slane %v343_v25, 4 }
  0xf5   : > { %v337_v28 = vrot.slane %v336_v26, 2  ;;  %v345_v29 = vadd.f32 %v344_v27, %v343_v25 }
  0xf7   : > { %v338_v30 = vadd.f32 %v337_v28, %v336_v26  ;;  %v346_v31 = vrot.slane %v345_v29, 2 }
  0xf9   : > { %v339_v32 = vrot.slane %v338_v30, 1  ;;  %v347_v33 = vadd.f32 %v346_v31, %v345_v29 }
  0xfb   : > { %v348_v34 = vrot.slane %v347_v33, 1  ;;  %v340_v35 = vadd.f32 %v339_v32, %v338_v30 }
  0xfd   : > { %v349_v36 = vadd.f32 %v348_v34, %v347_v33 }
  0xff   : > { %v350_v37 = vsel %vm275_vm0, %v340_v35, %v349_v36 }
 0x100   : > { %351 = vst [vmem:[%s211_s18] sm:$0x3] %v350_v37 }
 0x101 PF: > { %s15_s15 = sadd.s32 1, %s516_s15  }
 0x102   : > { %p12_p5 = scmp.ge.s32.totalorder %s15_s15, 4  }
 0x104   :  { %14 = sbr.rel (!%p12_p5) target bundleno = 1 (0x1), region = 74 }

// kernel: tile.23
= control target key start
LH: loop header
LB: loop body
LE: loop exit
PB: predicated region body
PF: predicated region fallthrough
CT: control target
= control target key end

     0   :  { %s22_s0 = inlined_call_operand.vmem [shape: f32[4], index: 0, kind: input, shape index: {}]   ;;  %s23_s1 = inlined_call_operand.vmem [shape: f32[4,4], index: 1, kind: output, shape index: {}]  }
   0x1   :  { %v4_v0 = vld [vmem:[%s22_s0] ss:$0 sm:$0xff] }
   0x2   :  { %5 = vst [vmem:[%s23_s1] sm:$0xf] %v4_v0 }

// kernel: tile.24
= control target key start
LH: loop header
LB: loop body
LE: loop exit
PB: predicated region body
PF: predicated region fallthrough
CT: control target
= control target key end

     0   :  { %vm8_vm0 = vcmask 31744   ;;  %s40_s8 = smov 4   ;;  %s41_s9 = smov 8   ;;  %vm14_vm1 = vcmask 130144   ;;  %vm20_vm2 = vcmask 97344   ;;  %vm26_vm3 = vcmask 64544   ;;  %s58_s0 = inlined_call_operand.vmem [shape: f32[4,4], index: 0, kind: input, shape index: {}]   ;;  %s59_s1 = inlined_call_operand.vmem [shape: f32[16], index: 1, kind: output, shape index: {}]  }
   0x1   :  { %v5_v0 = vld [vmem:[%s58_s0] sm:$0xf]  ;;  %s39_s0 = smov 12  }
   0x2   :  { %6 = vst [vmem:[#allocation1] sm:$0xf] %v5_v0 }
   0x9   :  { %v11_v1 = vld [vmem:[#allocation1 + $0x3] sm:$0x1]   ;;  %v23_v2 = vld [vmem:[#allocation1 + $0x1] sm:$0x1]   ;;  %v7_v3 = vld [vmem:[#allocation1] sm:$0x1]  }
   0xa   :  { %12 = vrot.lane.b32.xlu0 %v11_v1, %s39_s0  ;;  %24 = vrot.lane.b32.xlu1 %v23_v2, %s40_s8  ;;  %v17_v4 = vld [vmem:[#allocation1 + $0x2] sm:$0x1]   ;;  %9 = vst.msk [vmem:[#allocation0] sm:$0x1] %vm8_vm0, %v7_v3  }
   0xe   :  { %18 = vrot.lane.b32.xlu0 %v17_v4, %s41_s9 }
  0x7c   :  { %v13_v5 = vpop.permute.xlu0 %12   ;;  %v25_v6 = vpop.permute.xlu1 %24  }
  0x7d   :  { %15 = vst.msk [vmem:[#allocation0] sm:$0x1] %vm14_vm1, %v13_v5  }
  0x80   :  { %v19_v7 = vpop.permute.xlu0 %18  }
  0x81   :  { %21 = vst.msk [vmem:[#allocation0] sm:$0x1] %vm20_vm2, %v19_v7  }
  0x82   :  { %27 = vst.msk [vmem:[#allocation0] sm:$0x1] %vm26_vm3, %v25_v6  }
  0x89   :  { %v32_v8 = vld [vmem:[#allocation0] sm:$0x1] }
  0x8a   :  { %35 = vst [vmem:[%s59_s1] sm:$0x1] %v32_v8 }

// kernel: convolutional_decoder_forward.6
= control target key start
LH: loop header
LB: loop body
LE: loop exit
PB: predicated region body
PF: predicated region fallthrough
CT: control target
= control target key end

     0   :  { %s708_s15 = smov 0   ;;  %s767_s0 = inlined_call_operand.vmem [shape: bf16[128,81], index: 0, kind: input, shape index: {}]   ;;  %s768_s1 = inlined_call_operand.vmem [shape: bf16[81,128], index: 1, kind: input, shape index: {}]   ;;  %s769_s2 = inlined_call_operand.vmem [shape: f32[1,128], index: 2, kind: input, shape index: {}]   ;;  %s770_s3 = inlined_call_operand.vmem [shape: bf16[128,128], index: 3, kind: output, shape index: {0}]   ;;  %s771_s4 = inlined_call_operand.vmem [shape: f32[2,2,128], index: 4, kind: output, shape index: {1}]  }
   0x1 LB: > { %s714_s16 = sadd.s32 4294967295, %s680_s15   ;;  %p551_p0 = scmp.ge.s32.totalorder %s680_s15, 1  ;;  %s680_s15 = sphi %s708_s15, %s15_s15  }
   0x2   : > { %p166_p1 = scmp.lt.s32.totalorder %s680_s15, 3 }
   0x4   : > { %p167_p2 = pnand %p551_p0, %p166_p1 }
   0x5   : > { %s552_s21 = sshll.u32 (!%p167_p2), %s714_s16, 3  ;;  %p208_p4 = scmp.lt.s32.totalorder (!%p167_p2), %s714_s16, 1 }
   0x6   : > { %170 = sbr.rel (%p167_p2) target bundleno = 272 (0x110), region = 32  ;;  %p197_p3 = scmp.lt.s32.totalorder (!%p167_p2), %s552_s21, 15 }
   0xb   : > { %v664_v0 = vld [vmem:[%s768_s1 + $0x28] ss:$0 sps:$4 sm:$0x11]   ;;  %vm305_vm0 = vcmask 1040384   ;;  %v682_v1 = vmov 0   ;;  %v665_v4 = vld [vmem:[%s768_s1 + $0x20] sm:$0xff]  }
   0xc   : > { %v307_v2 = vsel %vm305_vm0, 65535, %v682_v1  ;;  %s773_s21 = smov (!%p197_p3, %s552_s21), 15  ;;  %v666_v5 = vld [vmem:[%s768_s1 + $0x18] sm:$0xff]   ;;  %vm292_vm1 = vcmask 662528   ;;  %v667_v7 = vld [vmem:[%s768_s1 + $0x10] sm:$0xff]   ;;  %v668_v9 = vld [vmem:[%s768_s1 + $0x8] sm:$0xff]  }
   0xd   : > { %v309_v3 = vand.u32 %v664_v0, %v307_v2  ;;  %s553_s24 = sshll.u32 %s773_s21, 2  ;;  %v669_v10 = vld [vmem:[%s768_s1] sm:$0xff]   ;;  %s775_s16 = smov (!%p208_p4, %s714_s16), 1 }
   0xe   : > { %s200_s27 = scalar_lea.vmem %s767_s0, %s553_s24  ;;  %v557_v13 = vld [vmem:[%s769_s2] ss:$0 sm:$0xff]  ;;  %s206_s12 = scalar_lea.vmem %s770_s3, %s553_s24 }
   0xf   : > { %623 = vmatprep.subr.bf16.mxu0 %v309_v3  ;;  %643 = vmatprep.subr.bf16.mxu1 %v309_v3  ;;  %v670_v6 = vld [vmem:[%s200_s27] sm:$0xff]   ;;  %v672_v8 = vld [vmem:[%s200_s27 + $0x10] sm:$0xff]   ;;  %v671_v11 = vld [vmem:[%s200_s27 + $0x8] sm:$0xff]   ;;  %s556_s13 = sshll.u32 %s775_s16, 1 }
  0x10   : > { %624 = vmatpush3.bf16.msra.mxu0 %v309_v3  ;;  %649 = vmatpush3.bf16.msra.mxu1 %v309_v3  ;;  %v673_v12 = vld [vmem:[%s200_s27 + $0x18] sm:$0xff]   ;;  %s211_s18 = scalar_lea.vmem %s771_s4, %s556_s13 }
  0x11   : > { %625 = vmatprep.subr.bf16.mxu0 %v665_v4  ;;  %644 = vmatprep.subr.bf16.mxu1 %v665_v4 }
  0x12   : > { %635 = vmatprep.mubr.msk.bf16.mxu0 %vm292_vm1, %v670_v6  ;;  %639 = vmatprep.mubr.msk.bf16.mxu1 %vm292_vm1, %v672_v8 }
  0x14   : > { %626 = vmatpush3.bf16.msra.mxu0 %v665_v4  ;;  %650 = vmatpush3.bf16.msra.mxu1 %v665_v4 }
  0x15   : > { %627 = vmatprep.subr.bf16.mxu0 %v666_v5  ;;  %645 = vmatprep.subr.bf16.mxu1 %v666_v5 }
  0x18   : > { %628 = vmatpush3.bf16.msra.mxu0 %v666_v5  ;;  %651 = vmatpush3.bf16.msra.mxu1 %v666_v5 }
  0x19   : > { %629 = vmatprep.subr.bf16.mxu0 %v667_v7  ;;  %646 = vmatprep.subr.bf16.mxu1 %v667_v7 }
  0x1c   : > { %630 = vmatpush3.bf16.msra.mxu0 %v667_v7  ;;  %652 = vmatpush3.bf16.msra.mxu1 %v667_v7 }
  0x1d   : > { %631 = vmatprep.subr.bf16.mxu0 %v668_v9  ;;  %647 = vmatprep.subr.bf16.mxu1 %v668_v9 }
  0x20   : > { %632 = vmatpush3.bf16.msra.mxu0 %v668_v9  ;;  %653 = vmatpush3.bf16.msra.mxu1 %v668_v9 }
  0x21   : > { %633 = vmatprep.subr.bf16.mxu0 %v669_v10  ;;  %648 = vmatprep.subr.bf16.mxu1 %v669_v10 }
  0x24   : > { %634 = vmatpush3.bf16.msra.mxu0 %v669_v10  ;;  %654 = vmatpush3.bf16.msra.mxu1 %v669_v10 }
  0x27   : > { %636 = vmatmul.mubr.msk.bf16.vlgmr.msra.gmra.mxu0 %vm292_vm1, %v671_v11  ;;  %640 = vmatmul.mubr.msk.bf16.vlgmr.msra.gmra.mxu1 %vm292_vm1, %v673_v12 }
  0xe7   : > { %v637_v14 = vpop.f32.mrf.mxu0  ;;  %v641_v15 = vpop.f32.mrf.mxu1 }
  0xe8   : > { %v354_v16 = vadd.f32 %v637_v14, %v557_v13  ;;  %v370_v18 = vadd.f32 %v641_v15, %v557_v13 }
  0xe9   : > { %v345_v17 = vpop.f32.mrf.mxu0  ;;  %v361_v19 = vpop.f32.mrf.mxu1 }
  0xea   : > { %v346_v20 = vadd.f32 %v557_v13, %v345_v17  ;;  %v362_v21 = vadd.f32 %v557_v13, %v361_v19  ;;  %v378_v25 = vmax.f32 %v354_v16, 0.0  ;;  %v382_v27 = vmax.f32 %v370_v18, 0.0 }
  0xeb   : > { %v638_v22 = vpop.f32.mrf.mxu0  ;;  %v642_v23 = vpop.f32.mrf.mxu1 }
  0xec   : > { %v357_v24 = vadd.f32 %v638_v22, %v557_v13  ;;  %v376_v26 = vmax.f32 %v346_v20, 0.0  ;;  %v373_v29 = vadd.f32 %v642_v23, %v557_v13  ;;  %v380_v32 = vmax.f32 %v362_v21, 0.0 }
  0xed   : > { %v348_v28 = vpop.f32.mrf.mxu0  ;;  %v364_v30 = vpop.f32.mrf.mxu1  ;;  %v439_v45 = vmul.f32 %v378_v25, %v378_v25  ;;  %v443_v57 = vmul.f32 %v382_v27, %v382_v27 }
  0xee   : > { %v379_v31 = vmax.f32 %v357_v24, 0.0  ;;  %v349_v33 = vadd.f32 %v557_v13, %v348_v28  ;;  %v365_v34 = vadd.f32 %v557_v13, %v364_v30  ;;  %v383_v35 = vmax.f32 %v373_v29, 0.0 }
  0xef   : > { %v437_v39 = vmul.f32 %v376_v26, %v376_v26  ;;  %v441_v51 = vmul.f32 %v380_v32, %v380_v32 }
  0xf0   : > { %v598_v36 = vpack.c.bf16 %v379_v31, %v378_v25  ;;  %v377_v37 = vmax.f32 %v349_v33, 0.0  ;;  %v381_v38 = vmax.f32 %v365_v34, 0.0  ;;  %v608_v40 = vpack.c.bf16 %v383_v35, %v382_v27 }
  0xf1   : > { %v440_v48 = vmul.f32 %v379_v31, %v379_v31  ;;  %v444_v60 = vmul.f32 %v383_v35, %v383_v35 }
  0xf2   : > { %610 = vst [vmem:[%s206_s12 + $0x8] sm:$0xff] %v598_v36   ;;  %v593_v41 = vpack.c.bf16 %v377_v37, %v376_v26  ;;  %v424_v42 = vadd.f32 %v377_v37, %v376_v26  ;;  %v438_v43 = vmul.f32 %v377_v37, %v377_v37  ;;  %v603_v44 = vpack.c.bf16 %v381_v38, %v380_v32 }
  0xf3   : > { %612 = vst [vmem:[%s206_s12 + $0x18] sm:$0xff] %v608_v40   ;;  %v442_v55 = vmul.f32 %v381_v38, %v381_v38 }
  0xf4   : > { %594 = vst [vmem:[%s206_s12] sm:$0xff] %v593_v41   ;;  %v425_v46 = vadd.f32 %v424_v42, %v378_v25  ;;  %v445_v47 = vadd.f32 %v438_v43, %v437_v39  ;;  %611 = vst [vmem:[%s206_s12 + $0x10] sm:$0xff] %v603_v44  }
  0xf6   : > { %v446_v49 = vadd.f32 %v445_v47, %v439_v45  ;;  %v426_v50 = vadd.f32 %v425_v46, %v379_v31 }
  0xf8   : > { %v427_v52 = vadd.f32 %v426_v50, %v380_v32  ;;  %v447_v53 = vadd.f32 %v446_v49, %v440_v48 }
  0xfa   : > { %v428_v54 = vadd.f32 %v427_v52, %v381_v38  ;;  %v448_v56 = vadd.f32 %v447_v53, %v441_v51 }
  0xfc   : > { %v429_v58 = vadd.f32 %v428_v54, %v382_v27  ;;  %v449_v59 = vadd.f32 %v448_v56, %v442_v55 }
  0xfe   : > { %v430_v61 = vadd.f32 %v429_v58, %v383_v35  ;;  %v450_v62 = vadd.f32 %v449_v59, %v443_v57 }
 0x100   : > { %v431_v63 = vrot.slane %v430_v61, 4  ;;  %v451_v0 = vadd.f32 %v450_v62, %v444_v60 }
 0x102   : > { %v432_v1 = vadd.f32 %v431_v63, %v430_v61  ;;  %v452_v2 = vrot.slane %v451_v0, 4 }
 0x104   : > { %v433_v3 = vrot.slane %v432_v1, 2  ;;  %v453_v4 = vadd.f32 %v452_v2, %v451_v0 }
 0x106   : > { %v434_v5 = vadd.f32 %v433_v3, %v432_v1  ;;  %v454_v6 = vrot.slane %v453_v4, 2 }
 0x108   : > { %v435_v7 = vrot.slane %v434_v5, 1  ;;  %v455_v8 = vadd.f32 %v454_v6, %v453_v4 }
 0x10a   : > { %v456_v9 = vrot.slane %v455_v8, 1  ;;  %v436_v10 = vadd.f32 %v435_v7, %v434_v5 }
 0x10c   : > { %v457_v11 = vadd.f32 %v456_v9, %v455_v8 }
 0x10e   : > { %v458_v12 = vsel %vm305_vm0, %v436_v10, %v457_v11 }
 0x10f   : > { %459 = vst [vmem:[%s211_s18] sm:$0x3] %v458_v12 }
 0x110 PF: > { %s15_s15 = sadd.s32 1, %s680_s15  }
 0x111   : > { %p12_p5 = scmp.ge.s32.totalorder %s15_s15, 4  }
 0x113   :  { %14 = sbr.rel (!%p12_p5) target bundleno = 1 (0x1), region = 74 }

// kernel: tile.28
= control target key start
LH: loop header
LB: loop body
LE: loop exit
PB: predicated region body
PF: predicated region fallthrough
CT: control target
= control target key end

     0   :  { %s22_s0 = inlined_call_operand.vmem [shape: f32[3], index: 0, kind: input, shape index: {}]   ;;  %s23_s1 = inlined_call_operand.vmem [shape: f32[4,3], index: 1, kind: output, shape index: {}]  }
   0x1   :  { %v4_v0 = vld [vmem:[%s22_s0] ss:$0 sm:$0xff] }
   0x2   :  { %5 = vst [vmem:[%s23_s1] sm:$0xf] %v4_v0 }

// kernel: tile.29
= control target key start
LH: loop header
LB: loop body
LE: loop exit
PB: predicated region body
PF: predicated region fallthrough
CT: control target
= control target key end

     0   :  { %vm8_vm0 = vcmask 23552   ;;  %s40_s8 = smov 3   ;;  %s41_s9 = smov 6   ;;  %vm14_vm1 = vcmask 97352   ;;  %vm20_vm2 = vcmask 72752   ;;  %vm26_vm3 = vcmask 48152   ;;  %s58_s0 = inlined_call_operand.vmem [shape: f32[4,3], index: 0, kind: input, shape index: {}]   ;;  %s59_s1 = inlined_call_operand.vmem [shape: f32[12], index: 1, kind: output, shape index: {}]  }
   0x1   :  { %v5_v0 = vld [vmem:[%s58_s0] sm:$0xf]  ;;  %s39_s0 = smov 9  }
   0x2   :  { %6 = vst [vmem:[#allocation1] sm:$0xf] %v5_v0 }
   0x9   :  { %v11_v1 = vld [vmem:[#allocation1 + $0x3] sm:$0x1]   ;;  %v23_v2 = vld [vmem:[#allocation1 + $0x1] sm:$0x1]   ;;  %v7_v3 = vld [vmem:[#allocation1] sm:$0x1]  }
   0xa   :  { %12 = vrot.lane.b32.xlu0 %v11_v1, %s39_s0  ;;  %24 = vrot.lane.b32.xlu1 %v23_v2, %s40_s8  ;;  %v17_v4 = vld [vmem:[#allocation1 + $0x2] sm:$0x1]   ;;  %9 = vst.msk [vmem:[#allocation0] sm:$0x1] %vm8_vm0, %v7_v3  }
   0xe   :  { %18 = vrot.lane.b32.xlu0 %v17_v4, %s41_s9 }
  0x7c   :  { %v13_v5 = vpop.permute.xlu0 %12   ;;  %v25_v6 = vpop.permute.xlu1 %24  }
  0x7d   :  { %15 = vst.msk [vmem:[#allocation0] sm:$0x1] %vm14_vm1, %v13_v5  }
  0x80   :  { %v19_v7 = vpop.permute.xlu0 %18  }
  0x81   :  { %21 = vst.msk [vmem:[#allocation0] sm:$0x1] %vm20_vm2, %v19_v7  }
  0x82   :  { %27 = vst.msk [vmem:[#allocation0] sm:$0x1] %vm26_vm3, %v25_v6  }
  0x89   :  { %v32_v8 = vld [vmem:[#allocation0] sm:$0x1] }
  0x8a   :  { %35 = vst [vmem:[%s59_s1] sm:$0x1] %v32_v8 }

// kernel: convolutional_decoder_forward.7
= control target key start
LH: loop header
LB: loop body
LE: loop exit
PB: predicated region body
PF: predicated region fallthrough
CT: control target
= control target key end

     0   :  { %s1109_s12 = smov 0   ;;  %s1244_s0 = inlined_call_operand.vmem [shape: bf16[512,45], index: 0, kind: input, shape index: {}]   ;;  %s1245_s1 = inlined_call_operand.vmem [shape: bf16[45,128], index: 1, kind: input, shape index: {}]   ;;  %s1246_s2 = inlined_call_operand.vmem [shape: f32[1,128], index: 2, kind: input, shape index: {}]   ;;  %s1247_s3 = inlined_call_operand.vmem [shape: f32[512,128], index: 3, kind: output, shape index: {}]  }
   0x1 LB: > { %s814_s13 = sadd.s32 4294967295, %s1086_s12   ;;  %p818_p0 = scmp.ge.s32.totalorder %s1086_s12, 1  ;;  %s1086_s12 = sphi %s1109_s12, %s13_s12  }
   0x2   : > { %p138_p1 = scmp.lt.s32.totalorder %s1086_s12, 3 }
   0x4   : > { %p139_p2 = pnand %p818_p0, %p138_p1 }
   0x5   : > { %s819_s16 = sshll.u32 (!%p139_p2), %s814_s13, 5 }
   0x6   : > { %142 = sbr.rel (%p139_p2) target bundleno = 310 (0x136), region = 32  ;;  %p163_p3 = scmp.lt.s32.totalorder (!%p139_p2), %s819_s16, 63 }
   0xb   : > { %v933_v0 = vld [vmem:[%s1245_s1 + $0x10] sm:$0x7f]   ;;  %vm366_vm0 = vcmask 1045504   ;;  %vm367_vm1 = vcmask 1046528   ;;  %v1088_v1 = vmov 65535   ;;  %v934_v5 = vld [vmem:[%s1245_s1 + $0x8] sm:$0xff]  }
   0xc   : > { %v368_v2 = vsel %vm366_vm0, 4294967295, %v1088_v1  ;;  %s1249_s16 = smov (!%p163_p3, %s819_s16), 63  ;;  %v935_v6 = vld [vmem:[%s1245_s1] sm:$0xff]   ;;  %vm317_vm2 = vcmask 367616  }
   0xd   : > { %v369_v3 = vsel %vm367_vm1, %v368_v2, 0  ;;  %s820_s21 = sshll.u32 %s1249_s16, 2  ;;  %v1169_v23 = vld [vmem:[%s1246_s2] ss:$0 sm:$0xff]  ;;  %s822_s27 = sshll.u32 %s1249_s16, 3 }
   0xe   : > { %v371_v4 = vand.u32 %v933_v0, %v369_v3  ;;  %s1132_s24 = scalar_lea.vmem %s1244_s0, %s820_s21  ;;  %s1197_s30 = scalar_lea.vmem %s1247_s3, %s822_s27 }
   0xf   : > { %v936_v7 = vld [vmem:[%s1132_s24] sm:$0xff]   ;;  %v938_v9 = vld [vmem:[%s1132_s24 + $0x8] sm:$0xff]   ;;  %v940_v11 = vld [vmem:[%s1132_s24 + $0x10] sm:$0xff]  }
  0x10   : > { %880 = vmatprep.subr.bf16.mxu0 %v371_v4  ;;  %918 = vmatprep.subr.bf16.mxu1 %v371_v4  ;;  %v937_v8 = vld [vmem:[%s1132_s24 + $0x40] sm:$0xff]   ;;  %v939_v10 = vld [vmem:[%s1132_s24 + $0x48] sm:$0xff]   ;;  %v941_v12 = vld [vmem:[%s1132_s24 + $0x50] sm:$0xff]  }
  0x11   : > { %881 = vmatpush3.bf16.msra.mxu0 %v371_v4  ;;  %921 = vmatpush3.bf16.msra.mxu1 %v371_v4  ;;  %v942_v13 = vld [vmem:[%s1132_s24 + $0x18] sm:$0xff]   ;;  %v944_v15 = vld [vmem:[%s1132_s24 + $0x20] sm:$0xff]   ;;  %v946_v17 = vld [vmem:[%s1132_s24 + $0x28] sm:$0xff]  }
  0x12   : > { %882 = vmatprep.subr.bf16.mxu0 %v934_v5  ;;  %919 = vmatprep.subr.bf16.mxu1 %v934_v5  ;;  %v943_v14 = vld [vmem:[%s1132_s24 + $0x58] sm:$0xff]   ;;  %v945_v16 = vld [vmem:[%s1132_s24 + $0x60] sm:$0xff]   ;;  %v947_v18 = vld [vmem:[%s1132_s24 + $0x68] sm:$0xff]  }
  0x13   : > { %886 = vmatprep.mubr.msk.bf16.mxu0 %vm317_vm2, %v936_v7  ;;  %902 = vmatprep.mubr.msk.bf16.mxu1 %vm317_vm2, %v937_v8  ;;  %v948_v19 = vld [vmem:[%s1132_s24 + $0x30] sm:$0xff]   ;;  %v950_v21 = vld [vmem:[%s1132_s24 + $0x38] sm:$0xff]  }
  0x14   : > { %v949_v20 = vld [vmem:[%s1132_s24 + $0x70] sm:$0xff]   ;;  %v951_v22 = vld [vmem:[%s1132_s24 + $0x78] sm:$0xff]  }
  0x15   : > { %883 = vmatpush3.bf16.msra.mxu0 %v934_v5  ;;  %922 = vmatpush3.bf16.msra.mxu1 %v934_v5 }
  0x16   : > { %884 = vmatprep.subr.bf16.mxu0 %v935_v6  ;;  %920 = vmatprep.subr.bf16.mxu1 %v935_v6 }
  0x19   : > { %885 = vmatpush3.bf16.msra.mxu0 %v935_v6  ;;  %923 = vmatpush3.bf16.msra.mxu1 %v935_v6 }
  0x1c   : > { %887 = vmatmul.mubr.msk.bf16.vlgmr.msra.gmra.mxu0 %vm317_vm2, %v938_v9  ;;  %903 = vmatmul.mubr.msk.bf16.vlgmr.msra.gmra.mxu1 %vm317_vm2, %v939_v10 }
  0x1d   : > { %890 = vmatprep.mubr.msk.bf16.mxu0 %vm317_vm2, %v940_v11  ;;  %906 = vmatprep.mubr.msk.bf16.mxu1 %vm317_vm2, %v941_v12 }
  0x24   : > { %891 = vmatmul.mubr.msk.bf16.gmra.mxu0 %vm317_vm2, %v942_v13  ;;  %907 = vmatmul.mubr.msk.bf16.gmra.mxu1 %vm317_vm2, %v943_v14 }
  0x25   : > { %894 = vmatprep.mubr.msk.bf16.mxu0 %vm317_vm2, %v944_v15  ;;  %910 = vmatprep.mubr.msk.bf16.mxu1 %vm317_vm2, %v945_v16 }
  0x2c   : > { %895 = vmatmul.mubr.msk.bf16.gmra.mxu0 %vm317_vm2, %v946_v17  ;;  %911 = vmatmul.mubr.msk.bf16.gmra.mxu1 %vm317_vm2, %v947_v18 }
  0x2d   : > { %898 = vmatprep.mubr.msk.bf16.mxu0 %vm317_vm2, %v948_v19  ;;  %914 = vmatprep.mubr.msk.bf16.mxu1 %vm317_vm2, %v949_v20 }
  0x34   : > { %899 = vmatmul.mubr.msk.bf16.gmra.mxu0 %vm317_vm2, %v950_v21  ;;  %915 = vmatmul.mubr.msk.bf16.gmra.mxu1 %vm317_vm2, %v951_v22 }
  0xdc   : > { %v888_v24 = vpop.f32.mrf.mxu0  ;;  %v904_v25 = vpop.f32.mrf.mxu1 }
  0xdd   : > { %v416_v26 = vadd.f32 %v888_v24, %v1169_v23  ;;  %v480_v27 = vadd.f32 %v904_v25, %v1169_v23 }
  0xde   : > { %v407_v28 = vpop.f32.mrf.mxu0  ;;  %v471_v29 = vpop.f32.mrf.mxu1 }
  0xdf   : > { %v536_v30 = vsub.f32 0.0, %v416_v26  ;;  %v552_v31 = vsub.f32 0.0, %v480_v27  ;;  %v408_v32 = vadd.f32 %v1169_v23, %v407_v28  ;;  %v472_v33 = vadd.f32 %v1169_v23, %v471_v29 }
  0xe0   : > { %v889_v34 = vpop.f32.mrf.mxu0  ;;  %v905_v35 = vpop.f32.mrf.mxu1 }
  0xe1   : > { %v570_v36 = vmul.f32 1.442695, %v536_v30  ;;  %v602_v37 = vmul.f32 1.442695, %v552_v31  ;;  %v534_v38 = vsub.f32 0.0, %v408_v32  ;;  %v550_v39 = vsub.f32 0.0, %v472_v33 }
  0xe2   : > { %v419_v40 = vadd.f32 %v889_v34, %v1169_v23  ;;  %v483_v41 = vadd.f32 %v905_v35, %v1169_v23  ;;  %v410_v42 = vpop.f32.mrf.mxu0  ;;  %v474_v43 = vpop.f32.mrf.mxu1 }
  0xe3   : > { %952 = vpow2.f32 %v570_v36  ;;  %v566_v44 = vmul.f32 1.442695, %v534_v38  ;;  %v598_v45 = vmul.f32 1.442695, %v550_v39  ;;  %v411_v46 = vadd.f32 %v1169_v23, %v410_v42 }
  0xe4   : > { %954 = vpow2.f32 %v602_v37  ;;  %v537_v47 = vsub.f32 0.0, %v419_v40  ;;  %v553_v48 = vsub.f32 0.0, %v483_v41  ;;  %v475_v49 = vadd.f32 %v1169_v23, %v474_v43  ;;  %v892_v50 = vpop.f32.mrf.mxu0  ;;  %v908_v51 = vpop.f32.mrf.mxu1 }
  0xe5   : > { %956 = vpow2.f32 %v566_v44  ;;  %v535_v52 = vsub.f32 0.0, %v411_v46  ;;  %v432_v53 = vadd.f32 %v892_v50, %v1169_v23  ;;  %v496_v54 = vadd.f32 %v908_v51, %v1169_v23 }
  0xe6   : > { %958 = vpow2.f32 %v598_v45  ;;  %v572_v55 = vmul.f32 1.442695, %v537_v47  ;;  %v604_v56 = vmul.f32 1.442695, %v553_v48  ;;  %v551_v57 = vsub.f32 0.0, %v475_v49  ;;  %v423_v58 = vpop.f32.mrf.mxu0  ;;  %v487_v59 = vpop.f32.mrf.mxu1 }
  0xe7   : > { %v568_v60 = vmul.f32 1.442695, %v535_v52  ;;  %v540_v61 = vsub.f32 0.0, %v432_v53  ;;  %v556_v62 = vsub.f32 0.0, %v496_v54  ;;  %v424_v63 = vadd.f32 %v1169_v23, %v423_v58 }
  0xe8   : > { %960 = vpow2.f32 %v572_v55  ;;  %v600_v0 = vmul.f32 1.442695, %v551_v57  ;;  %v488_v1 = vadd.f32 %v1169_v23, %v487_v59  ;;  %v893_v2 = vpop.f32.mrf.mxu0  ;;  %v909_v3 = vpop.f32.mrf.mxu1 }
  0xe9   : > { %962 = vpow2.f32 %v604_v56  ;;  %v578_v4 = vmul.f32 1.442695, %v540_v61  ;;  %v610_v5 = vmul.f32 1.442695, %v556_v62  ;;  %v538_v6 = vsub.f32 0.0, %v424_v63 }
  0xea   : > { %964 = vpow2.f32 %v568_v60  ;;  %v554_v7 = vsub.f32 0.0, %v488_v1  ;;  %v435_v8 = vadd.f32 %v893_v2, %v1169_v23  ;;  %v499_v9 = vadd.f32 %v909_v3, %v1169_v23  ;;  %v426_v10 = vpop.f32.mrf.mxu0  ;;  %v490_v11 = vpop.f32.mrf.mxu1 }
  0xeb   : > { %966 = vpow2.f32 %v600_v0  ;;  %v574_v12 = vmul.f32 1.442695, %v538_v6  ;;  %v427_v13 = vadd.f32 %v1169_v23, %v426_v10  ;;  %v491_v14 = vadd.f32 %v1169_v23, %v490_v11 }
  0xec   : > { %968 = vpow2.f32 %v578_v4  ;;  %v606_v15 = vmul.f32 1.442695, %v554_v7  ;;  %v541_v16 = vsub.f32 0.0, %v435_v8  ;;  %v557_v17 = vsub.f32 0.0, %v499_v9  ;;  %v896_v18 = vpop.f32.mrf.mxu0  ;;  %v912_v19 = vpop.f32.mrf.mxu1 }
  0xed   : > { %970 = vpow2.f32 %v610_v5  ;;  %v539_v20 = vsub.f32 0.0, %v427_v13  ;;  %v555_v27 = vsub.f32 0.0, %v491_v14  ;;  %v448_v40 = vadd.f32 %v896_v18, %v1169_v23 }
  0xee   : > { %972 = vpow2.f32 %v574_v12  ;;  %v580_v21 = vmul.f32 1.442695, %v541_v16  ;;  %v612_v22 = vmul.f32 1.442695, %v557_v17  ;;  %v439_v24 = vpop.f32.mrf.mxu0  ;;  %v503_v25 = vpop.f32.mrf.mxu1  ;;  %v512_v42 = vadd.f32 %v912_v19, %v1169_v23 }
  0xef   : > { %974 = vpow2.f32 %v606_v15  ;;  %v576_v26 = vmul.f32 1.442695, %v539_v20  ;;  %v608_v37 = vmul.f32 1.442695, %v555_v27  ;;  %v544_v51 = vsub.f32 0.0, %v448_v40 }
  0xf0   : > { %v953_v28 = vpop.eup %952  ;;  %976 = vpow2.f32 %v580_v21  ;;  %v897_v29 = vpop.f32.mrf.mxu0  ;;  %v560_v54 = vsub.f32 0.0, %v512_v42  ;;  %v440_v55 = vadd.f32 %v1169_v23, %v439_v24  ;;  %v504_v58 = vadd.f32 %v1169_v23, %v503_v25 }
  0xf1   : > { %v955_v30 = vpop.eup %954  ;;  %v632_v31 = vadd.f32 1.0, %v953_v28  ;;  %978 = vpow2.f32 %v612_v22  ;;  %v913_v34 = vpop.f32.mrf.mxu1  ;;  %v451_v62 = vadd.f32 %v897_v29, %v1169_v23  ;;  %v586_v2 = vmul.f32 1.442695, %v544_v51 }
  0xf2   : > { %v957_v32 = vpop.eup %956  ;;  %v648_v33 = vadd.f32 1.0, %v955_v30  ;;  %980 = vpow2.f32 %v576_v26  ;;  %v442_v38 = vpop.f32.mrf.mxu0  ;;  %v515_v3 = vadd.f32 %v913_v34, %v1169_v23  ;;  %v618_v6 = vmul.f32 1.442695, %v560_v54 }
  0xf3   : > { %v959_v35 = vpop.eup %958  ;;  %982 = vrcp.f32 %v632_v31  ;;  %v630_v36 = vadd.f32 1.0, %v957_v32  ;;  %v506_v45 = vpop.f32.mrf.mxu1  ;;  %v542_v7 = vsub.f32 0.0, %v440_v55  ;;  %v558_v10 = vsub.f32 0.0, %v504_v58 }
  0xf4   : > { %984 = vrcp.f32 %v648_v33  ;;  %v646_v39 = vadd.f32 1.0, %v959_v35  ;;  %v900_v48 = vpop.f32.mrf.mxu0  ;;  %v443_v11 = vadd.f32 %v1169_v23, %v442_v38  ;;  %v545_v15 = vsub.f32 0.0, %v451_v62 }
  0xf5   : > { %v961_v41 = vpop.eup %960  ;;  %986 = vrcp.f32 %v630_v36  ;;  %v916_v59 = vpop.f32.mrf.mxu1  ;;  %v507_v16 = vadd.f32 %v1169_v23, %v506_v45  ;;  %v561_v20 = vsub.f32 0.0, %v515_v3  ;;  %v464_v21 = vadd.f32 %v900_v48, %v1169_v23 }
  0xf6   : > { %v963_v43 = vpop.eup %962  ;;  %988 = vrcp.f32 %v646_v39  ;;  %v633_v44 = vadd.f32 1.0, %v961_v41  ;;  %v455_v63 = vpop.f32.mrf.mxu0  ;;  %v582_v24 = vmul.f32 1.442695, %v542_v7  ;;  %v528_v25 = vadd.f32 %v916_v59, %v1169_v23 }
  0xf7   : > { %v965_v46 = vpop.eup %964  ;;  %v649_v47 = vadd.f32 1.0, %v963_v43  ;;  %990 = vpow2.f32 %v608_v37  ;;  %v519_v12 = vpop.f32.mrf.mxu1  ;;  %v614_v27 = vmul.f32 1.442695, %v558_v10  ;;  %v543_v28 = vsub.f32 0.0, %v443_v11 }
  0xf8   : > { %v967_v49 = vpop.eup %966  ;;  %992 = vrcp.f32 %v633_v44  ;;  %v631_v50 = vadd.f32 1.0, %v965_v46  ;;  %v901_v17 = vpop.f32.mrf.mxu0  ;;  %v456_v29 = vadd.f32 %v1169_v23, %v455_v63  ;;  %v588_v32 = vmul.f32 1.442695, %v545_v15 }
  0xf9   : > { %v969_v52 = vpop.eup %968  ;;  %994 = vrcp.f32 %v649_v47  ;;  %v647_v53 = vadd.f32 1.0, %v967_v49  ;;  %v917_v30 = vpop.f32.mrf.mxu1  ;;  %v559_v33 = vsub.f32 0.0, %v507_v16  ;;  %v520_v34 = vadd.f32 %v1169_v23, %v519_v12 }
  0xfa   : > { %v971_v56 = vpop.eup %970  ;;  %996 = vrcp.f32 %v631_v50  ;;  %v636_v57 = vadd.f32 1.0, %v969_v52  ;;  %v458_v35 = vpop.f32.mrf.mxu0  ;;  %v620_v37 = vmul.f32 1.442695, %v561_v20  ;;  %v548_v38 = vsub.f32 0.0, %v464_v21 }
  0xfb   : > { %v973_v60 = vpop.eup %972  ;;  %998 = vrcp.f32 %v647_v53  ;;  %v652_v61 = vadd.f32 1.0, %v971_v56  ;;  %v467_v39 = vadd.f32 %v901_v17, %v1169_v23  ;;  %v564_v42 = vsub.f32 0.0, %v528_v25  ;;  %v522_v54 = vpop.f32.mrf.mxu1 }
  0xfc   : > { %v975_v0 = vpop.eup %974  ;;  %1000 = vrcp.f32 %v636_v57  ;;  %v634_v1 = vadd.f32 1.0, %v973_v60  ;;  %v531_v43 = vadd.f32 %v917_v30, %v1169_v23  ;;  %v584_v45 = vmul.f32 1.442695, %v543_v28 }
  0xfd   : > { %v977_v4 = vpop.eup %976  ;;  %1002 = vrcp.f32 %v652_v61  ;;  %v650_v5 = vadd.f32 1.0, %v975_v0  ;;  %v546_v46 = vsub.f32 0.0, %v456_v29  ;;  %v459_v47 = vadd.f32 %v1169_v23, %v458_v35 }
  0xfe   : > { %v979_v8 = vpop.eup %978  ;;  %1004 = vrcp.f32 %v634_v1  ;;  %v637_v9 = vadd.f32 1.0, %v977_v4  ;;  %v616_v49 = vmul.f32 1.442695, %v559_v33  ;;  %v562_v50 = vsub.f32 0.0, %v520_v34 }
  0xff   : > { %v981_v13 = vpop.eup %980  ;;  %1006 = vrcp.f32 %v650_v5  ;;  %v653_v14 = vadd.f32 1.0, %v979_v8  ;;  %v594_v52 = vmul.f32 1.442695, %v548_v38  ;;  %v549_v53 = vsub.f32 0.0, %v467_v39 }
 0x100   : > { %v983_v18 = vpop.eup %982  ;;  %1008 = vrcp.f32 %v637_v9  ;;  %v635_v19 = vadd.f32 1.0, %v981_v13  ;;  %v626_v56 = vmul.f32 1.442695, %v564_v42  ;;  %v565_v57 = vsub.f32 0.0, %v531_v43 }
 0x101   : > { %v985_v22 = vpop.eup %984  ;;  %728 = vst [vmem:[%s1197_s30 + $0x10] sm:$0xff] %v983_v18  ;;  %1010 = vrcp.f32 %v653_v14  ;;  %v590_v59 = vmul.f32 1.442695, %v546_v46  ;;  %v547_v60 = vsub.f32 0.0, %v459_v47  ;;  %v622_v62 = vmul.f32 1.442695, %v562_v50 }
 0x102   : > { %v987_v26 = vpop.eup %986  ;;  %744 = vst [vmem:[%s1197_s30 + $0x90] sm:$0xff] %v985_v22  ;;  %1012 = vrcp.f32 %v635_v19  ;;  %v523_v63 = vadd.f32 %v1169_v23, %v522_v54  ;;  %v596_v1 = vmul.f32 1.442695, %v549_v53  ;;  %v628_v3 = vmul.f32 1.442695, %v565_v57 }
 0x103   : > { %v989_v31 = vpop.eup %988  ;;  %726 = vst [vmem:[%s1197_s30] sm:$0xff] %v987_v26  ;;  %1014 = vpow2.f32 %v586_v2  ;;  %v592_v5 = vmul.f32 1.442695, %v547_v60 }
 0x104   : > { %v991_v36 = vpop.eup %990  ;;  %742 = vst [vmem:[%s1197_s30 + $0x80] sm:$0xff] %v989_v31  ;;  %1016 = vpow2.f32 %v618_v6  ;;  %v563_v7 = vsub.f32 0.0, %v523_v63 }
 0x105   : > { %v993_v40 = vpop.eup %992  ;;  %v651_v41 = vadd.f32 1.0, %v991_v36  ;;  %1018 = vpow2.f32 %v582_v24 }
 0x106   : > { %v995_v44 = vpop.eup %994  ;;  %729 = vst [vmem:[%s1197_s30 + $0x18] sm:$0xff] %v993_v40  ;;  %1020 = vpow2.f32 %v614_v27  ;;  %v624_v14 = vmul.f32 1.442695, %v563_v7 }
 0x107   : > { %v997_v48 = vpop.eup %996  ;;  %745 = vst [vmem:[%s1197_s30 + $0x98] sm:$0xff] %v995_v44  ;;  %1022 = vrcp.f32 %v651_v41 }
 0x108   : > { %v999_v51 = vpop.eup %998  ;;  %727 = vst [vmem:[%s1197_s30 + $0x8] sm:$0xff] %v997_v48  ;;  %1024 = vpow2.f32 %v588_v32 }
 0x109   : > { %v1001_v55 = vpop.eup %1000  ;;  %743 = vst [vmem:[%s1197_s30 + $0x88] sm:$0xff] %v999_v51  ;;  %1026 = vpow2.f32 %v620_v37 }
 0x10a   : > { %v1003_v58 = vpop.eup %1002  ;;  %732 = vst [vmem:[%s1197_s30 + $0x30] sm:$0xff] %v1001_v55  ;;  %1028 = vpow2.f32 %v584_v45 }
 0x10b   : > { %v1005_v61 = vpop.eup %1004  ;;  %748 = vst [vmem:[%s1197_s30 + $0xb0] sm:$0xff] %v1003_v58  ;;  %1030 = vpow2.f32 %v616_v49 }
 0x10c   : > { %v1007_v0 = vpop.eup %1006  ;;  %730 = vst [vmem:[%s1197_s30 + $0x20] sm:$0xff] %v1005_v61  ;;  %1032 = vpow2.f32 %v594_v52 }
 0x10d   : > { %v1009_v2 = vpop.eup %1008  ;;  %746 = vst [vmem:[%s1197_s30 + $0xa0] sm:$0xff] %v1007_v0  ;;  %1034 = vpow2.f32 %v626_v56 }
 0x10e   : > { %v1011_v4 = vpop.eup %1010  ;;  %733 = vst [vmem:[%s1197_s30 + $0x38] sm:$0xff] %v1009_v2  ;;  %1036 = vpow2.f32 %v590_v59 }
 0x10f   : > { %v1013_v6 = vpop.eup %1012  ;;  %749 = vst [vmem:[%s1197_s30 + $0xb8] sm:$0xff] %v1011_v4  ;;  %1038 = vpow2.f32 %v622_v62 }
 0x110   : > { %v1015_v8 = vpop.eup %1014  ;;  %731 = vst [vmem:[%s1197_s30 + $0x28] sm:$0xff] %v1013_v6  ;;  %1040 = vpow2.f32 %v596_v1 }
 0x111   : > { %v1017_v23 = vpop.eup %1016  ;;  %v640_v9 = vadd.f32 1.0, %v1015_v8  ;;  %1042 = vpow2.f32 %v628_v3 }
 0x112   : > { %v1019_v10 = vpop.eup %1018  ;;  %v656_v11 = vadd.f32 1.0, %v1017_v23  ;;  %1044 = vpow2.f32 %v592_v5 }
 0x113   : > { %v1021_v12 = vpop.eup %1020  ;;  %1046 = vrcp.f32 %v640_v9  ;;  %v638_v13 = vadd.f32 1.0, %v1019_v10 }
 0x114   : > { %v1023_v15 = vpop.eup %1022  ;;  %1048 = vrcp.f32 %v656_v11  ;;  %v654_v16 = vadd.f32 1.0, %v1021_v12 }
 0x115   : > { %v1025_v17 = vpop.eup %1024  ;;  %747 = vst [vmem:[%s1197_s30 + $0xa8] sm:$0xff] %v1023_v15  ;;  %1050 = vrcp.f32 %v638_v13 }
 0x116   : > { %v1027_v18 = vpop.eup %1026  ;;  %1052 = vrcp.f32 %v654_v16  ;;  %v641_v19 = vadd.f32 1.0, %v1025_v17 }
 0x117   : > { %v1029_v20 = vpop.eup %1028  ;;  %v657_v21 = vadd.f32 1.0, %v1027_v18  ;;  %1054 = vpow2.f32 %v624_v14 }
 0x118   : > { %v1031_v22 = vpop.eup %1030  ;;  %1056 = vrcp.f32 %v641_v19  ;;  %v639_v24 = vadd.f32 1.0, %v1029_v20 }
 0x119   : > { %v1033_v25 = vpop.eup %1032  ;;  %1058 = vrcp.f32 %v657_v21  ;;  %v655_v26 = vadd.f32 1.0, %v1031_v22 }
 0x11a   : > { %v1035_v27 = vpop.eup %1034  ;;  %1060 = vrcp.f32 %v639_v24  ;;  %v644_v28 = vadd.f32 1.0, %v1033_v25 }
 0x11b   : > { %v1037_v29 = vpop.eup %1036  ;;  %1062 = vrcp.f32 %v655_v26  ;;  %v660_v30 = vadd.f32 1.0, %v1035_v27 }
 0x11c   : > { %v1039_v31 = vpop.eup %1038  ;;  %1064 = vrcp.f32 %v644_v28  ;;  %v642_v32 = vadd.f32 1.0, %v1037_v29 }
 0x11d   : > { %v1041_v33 = vpop.eup %1040  ;;  %1066 = vrcp.f32 %v660_v30  ;;  %v658_v34 = vadd.f32 1.0, %v1039_v31 }
 0x11e   : > { %v1043_v35 = vpop.eup %1042  ;;  %1068 = vrcp.f32 %v642_v32  ;;  %v645_v36 = vadd.f32 1.0, %v1041_v33 }
 0x11f   : > { %v1045_v37 = vpop.eup %1044  ;;  %1070 = vrcp.f32 %v658_v34  ;;  %v661_v38 = vadd.f32 1.0, %v1043_v35 }
 0x120   : > { %v1047_v39 = vpop.eup %1046  ;;  %1072 = vrcp.f32 %v645_v36  ;;  %v643_v40 = vadd.f32 1.0, %v1045_v37 }
 0x121   : > { %v1049_v41 = vpop.eup %1048  ;;  %736 = vst [vmem:[%s1197_s30 + $0x50] sm:$0xff] %v1047_v39  ;;  %1074 = vrcp.f32 %v661_v38 }
 0x122   : > { %v1051_v42 = vpop.eup %1050  ;;  %752 = vst [vmem:[%s1197_s30 + $0xd0] sm:$0xff] %v1049_v41  ;;  %1076 = vrcp.f32 %v643_v40 }
 0x123   : > { %v1053_v43 = vpop.eup %1052  ;;  %734 = vst [vmem:[%s1197_s30 + $0x40] sm:$0xff] %v1051_v42 }
 0x124   : > { %v1055_v44 = vpop.eup %1054  ;;  %750 = vst [vmem:[%s1197_s30 + $0xc0] sm:$0xff] %v1053_v43 }
 0x125   : > { %v1057_v45 = vpop.eup %1056  ;;  %v659_v46 = vadd.f32 1.0, %v1055_v44 }
 0x126   : > { %v1059_v47 = vpop.eup %1058  ;;  %737 = vst [vmem:[%s1197_s30 + $0x58] sm:$0xff] %v1057_v45 }
 0x127   : > { %v1061_v48 = vpop.eup %1060  ;;  %753 = vst [vmem:[%s1197_s30 + $0xd8] sm:$0xff] %v1059_v47  ;;  %1078 = vrcp.f32 %v659_v46 }
 0x128   : > { %v1063_v49 = vpop.eup %1062  ;;  %735 = vst [vmem:[%s1197_s30 + $0x48] sm:$0xff] %v1061_v48 }
 0x129   : > { %v1065_v50 = vpop.eup %1064  ;;  %751 = vst [vmem:[%s1197_s30 + $0xc8] sm:$0xff] %v1063_v49 }
 0x12a   : > { %v1067_v51 = vpop.eup %1066  ;;  %740 = vst [vmem:[%s1197_s30 + $0x70] sm:$0xff] %v1065_v50 }
 0x12b   : > { %v1069_v52 = vpop.eup %1068  ;;  %756 = vst [vmem:[%s1197_s30 + $0xf0] sm:$0xff] %v1067_v51 }
 0x12c   : > { %v1071_v53 = vpop.eup %1070  ;;  %738 = vst [vmem:[%s1197_s30 + $0x60] sm:$0xff] %v1069_v52 }
 0x12d   : > { %v1073_v54 = vpop.eup %1072  ;;  %754 = vst [vmem:[%s1197_s30 + $0xe0] sm:$0xff] %v1071_v53 }
 0x12e   : > { %v1075_v55 = vpop.eup %1074  ;;  %741 = vst [vmem:[%s1197_s30 + $0x78] sm:$0xff] %v1073_v54 }
 0x12f   : > { %v1077_v56 = vpop.eup %1076  ;;  %757 = vst [vmem:[%s1197_s30 + $0xf8] sm:$0xff] %v1075_v55 }
 0x130   : > { %739 = vst [vmem:[%s1197_s30 + $0x68] sm:$0xff] %v1077_v56 }
 0x134   : > { %v1079_v57 = vpop.eup %1078 }
 0x135   : > { %755 = vst [vmem:[%s1197_s30 + $0xe8] sm:$0xff] %v1079_v57 }
 0x136 PF: > { %s13_s12 = sadd.s32 1, %s1086_s12  }
 0x137   : > { %p10_p4 = scmp.ge.s32.totalorder %s13_s12, 4  }
 0x139   :  { %12 = sbr.rel (!%p10_p4) target bundleno = 1 (0x1), region = 62 }

</bundles_post_ra>
